<compile_context>
chip_gen: v5e
topology: v5e:2x2
jax: 0.10.0
libtpu: 0.0.40
codegen_flags: <defaults>
</compile_context>

<pallas_src>
import functools

import jax
import jax.numpy as jnp
from jax import lax
from jax.experimental import pallas as pl
from jax.experimental.pallas import tpu as pltpu

_INV_SQRT2 = 0.7071067811865476


def _gelu_exact(x):
    # torch.nn.functional.gelu default: x * 0.5 * (1 + erf(x / sqrt(2)))
    return x * 0.5 * (1.0 + lax.erf(x * _INV_SQRT2))


def mlp3_kernel(x_ref, w1_ref, b1_ref, w2_ref, b2_ref, o_ref, *, H, W):
    # x_ref : (Cin,    L)     raw image(s); L = images_per_step * H * W lanes
    # w1_ref: (Cmid,   9*Cin) conv1 weights flattened over (tap, cin)
    # b1_ref: (Cmid,   1)
    # w2_ref: (9*Cout, Cmid)  conv2 weights stacked tap-major
    # b2_ref: (Cout,   1)
    # o_ref : (Cout,   L)     lane-dense output tile
    L = x_ref.shape[-1]
    S = H * W
    Cout = o_ref.shape[0]

    # ---- boundary predicates: computed ONCE, shared by conv1 and conv2 taps ----
    lane = lax.broadcasted_iota(jnp.int32, (1, L), 1)
    # local flat index within an image (modulo S handles batch folded into lanes)
    q = jnp.bitwise_and(lane, S - 1) if (S & (S - 1)) == 0 else lane % S
    w_idx = jnp.bitwise_and(q, W - 1) if (W & (W - 1)) == 0 else q % W
    row_ok = {-1: q >= W, 0: None, 1: q < (H - 1) * W}
    col_ok = {-1: w_idx >= 1, 0: None, 1: w_idx < W - 1}

    masks = {}
    for dy in (-1, 0, 1):
        for dx in (-1, 0, 1):
            m, c = row_ok[dy], col_ok[dx]
            masks[(dy, dx)] = c if m is None else (m if c is None else m & c)

    def shift_mask(v, dy, dx):
        # v[:, p] <- v[:, p + dy*W + dx]; zero where the source pixel falls
        # outside the (H, W) image.  The mask also kills the roll wrap-around
        # and (with batch folded into lanes) any cross-image leakage.
        d = dy * W + dx
        out = v if d == 0 else pltpu.roll(v, (-d) % L, axis=1)
        m = masks[(dy, dx)]
        return out if m is None else jnp.where(m, out, 0.0)

    # ---- conv1: in-kernel im2col (9 cheap (Cin, L) lane-rolls) + ONE K=9*Cin matmul ----
    x = x_ref[...]
    x_col = jnp.concatenate(
        [shift_mask(x, ky - 1, kx - 1) for ky in range(3) for kx in range(3)],
        axis=0)                                                     # (9*Cin, L)
    hidden = jnp.dot(w1_ref[...], x_col,
                     preferred_element_type=jnp.float32)            # (Cmid, L)
    hidden = _gelu_exact(hidden + b1_ref[...])                      # exact erf GELU

    # ---- conv2: ONE M=9*Cout matmul, then cheap per-tap (Cout, L) roll/mask/add ----
    y = jnp.dot(w2_ref[...], hidden,
                preferred_element_type=jnp.float32)                 # (9*Cout, L)
    acc = jnp.zeros((Cout, L), jnp.float32)
    for ky in range(3):
        for kx in range(3):
            t = ky * 3 + kx
            acc = acc + shift_mask(y[t * Cout:(t + 1) * Cout, :], ky - 1, kx - 1)
    o_ref[...] = (acc + b2_ref[...]).astype(o_ref.dtype)            # lane-dense store


def _default_images_per_step(N, S):
    """Chip-aware batch handling.

    Single-TC chips (v2..v6): fold the whole batch into the lane axis to
    amortize the ~0.35us per-grid-step overhead and fill the MXU column dim.
    Dual-core v7x: keep one image per (parallel) grid step so both
    TensorCores get work.
    """
    try:
        kind = jax.devices()[0].device_kind.lower()
    except Exception:
        kind = ""
    if "v7" in kind or "7x" in kind:
        return 1
    max_b = max(1, 4096 // S)       # keep per-step lane width / VMEM modest
    b = min(N, max_b)
    while N % b:
        b -= 1
    return b


def mlp3_forward(x_nchw, w1, b1, w2, b2, images_per_step=None):
    """x_nchw: (N, Cin, H, W); w1: (Cmid, Cin, 3, 3); w2: (Cout, Cmid, 3, 3)."""
    N, Cin, H, W = x_nchw.shape
    Cmid = w1.shape[0]
    Cout = w2.shape[0]
    S = H * W

    if images_per_step is None:
        images_per_step = _default_images_per_step(N, S)
    B = images_per_step
    assert N % B == 0
    G = N // B
    L = B * S

    # channels on sublanes, (batch*spatial) on lanes — one cheap wrapper transpose.
    x_cl = jnp.transpose(x_nchw.reshape(N, Cin, S), (1, 0, 2)).reshape(Cin, N * S)

    # weights reordered to match the in-kernel tap ordering (tap = ky*3 + kx)
    w1k = jnp.transpose(w1, (0, 2, 3, 1)).reshape(Cmid, 9 * Cin)    # (Cmid, 9*Cin)
    w2k = jnp.transpose(w2, (2, 3, 0, 1)).reshape(9 * Cout, Cmid)   # (9*Cout, Cmid)
    b1k = b1.reshape(Cmid, 1)
    b2k = b2.reshape(Cout, 1)

    kernel = functools.partial(mlp3_kernel, H=H, W=W)

    out = pl.pallas_call(
        kernel,
        out_shape=jax.ShapeDtypeStruct((Cout, N * S), x_nchw.dtype),
        grid_spec=pltpu.PrefetchScalarGridSpec(
            num_scalar_prefetch=0,
            grid=(G,),
            in_specs=[
                pl.BlockSpec((Cin, L), lambda g: (0, g)),
                pl.BlockSpec((Cmid, 9 * Cin), lambda g: (0, 0)),
                pl.BlockSpec((Cmid, 1), lambda g: (0, 0)),
                pl.BlockSpec((9 * Cout, Cmid), lambda g: (0, 0)),
                pl.BlockSpec((Cout, 1), lambda g: (0, 0)),
            ],
            out_specs=pl.BlockSpec((Cout, L), lambda g: (0, g)),
        ),
        compiler_params=pltpu.CompilerParams(
            dimension_semantics=("parallel",)),   # images are independent
    )(x_cl, w1k, b1k, w2k, b2k)

    # (Cout, N*S) -> (N, Cout, H, W): wrapper layout plumbing only.
    return jnp.transpose(out.reshape(Cout, N, S), (1, 0, 2)).reshape(N, Cout, H, W)


def mlp3_reference(x, w1, b1, w2, b2):
    """Pure-JAX reference (lax conv), NCHW, for correctness check."""
    dn = ('NCHW', 'OIHW', 'NCHW')
    y = lax.conv_general_dilated(x, w1, (1, 1), ((1, 1), (1, 1)),
                                 dimension_numbers=dn)
    y = y + b1[None, :, None, None]
    y = _gelu_exact(y)
    y = lax.conv_general_dilated(y, w2, (1, 1), ((1, 1), (1, 1)),
                                 dimension_numbers=dn)
    y = y + b2[None, :, None, None]
    return y


def _init_conv_params(key, out_ch, in_ch, k):
    # Deterministic init mirroring PyTorch Conv2d default (uniform, 1/sqrt(fan_in)).
    kw, kb = jax.random.split(key)
    fan_in = in_ch * k * k
    bound = 1.0 / (fan_in ** 0.5)
    w = jax.random.uniform(kw, (out_ch, in_ch, k, k), jnp.float32, -bound, bound)
    b = jax.random.uniform(kb, (out_ch,), jnp.float32, -bound, bound)
    return w, b


if __name__ == "__main__":
    # MLP3(in_channels=4, out_channels=4, mid_channels=32), input (2, 4, 16, 16)
    N, Cin, Cmid, Cout, H, W = 2, 4, 32, 4, 16, 16

    key = jax.random.PRNGKey(0)
    kx, k1, k2 = jax.random.split(key, 3)

    x = jax.random.normal(kx, (N, Cin, H, W), jnp.float32)
    w1, b1 = _init_conv_params(k1, Cmid, Cin, 3)
    w2, b2 = _init_conv_params(k2, Cout, Cmid, 3)

    fwd = jax.jit(mlp3_forward)
    out = jax.block_until_ready(fwd(x, w1, b1, w2, b2))
    ref = jax.block_until_ready(mlp3_reference(x, w1, b1, w2, b2))

    assert out.shape == (N, Cout, H, W)
    max_err = jnp.max(jnp.abs(out - ref))
    assert jnp.allclose(out, ref, atol=1e-4, rtol=1e-4), f"max abs err = {max_err}"

    print("KERNEL_OK")
</pallas_src>

<mosaic_0001>
module attributes {stable_mosaic.version = 11 : i64} {
  func.func @mlp3_kernel(%arg0: i32, %arg1: memref<4x512xf32, #tpu.memory_space<vmem>>, %arg2: memref<32x36xf32, #tpu.memory_space<vmem>>, %arg3: memref<32x1xf32, #tpu.memory_space<vmem>>, %arg4: memref<36x32xf32, #tpu.memory_space<vmem>>, %arg5: memref<4x1xf32, #tpu.memory_space<vmem>>, %arg6: memref<4x512xf32, #tpu.memory_space<vmem>>) attributes {dimension_semantics = [#tpu.dimension_semantics<parallel>], iteration_bounds = array<i64: 1>, scalar_prefetch = 0 : i64, scratch_operands = 0 : i64, tpu.core_type = #tpu.core_type<tc>, window_params = [{transform_indices = @transform_0, window_bounds = array<i64: 4, 512>}, {pipeline_mode = #tpu.pipeline_mode<synchronous>, transform_indices = @transform_1, window_bounds = array<i64: 32, 36>}, {pipeline_mode = #tpu.pipeline_mode<synchronous>, transform_indices = @transform_2, window_bounds = array<i64: 32, 1>}, {pipeline_mode = #tpu.pipeline_mode<synchronous>, transform_indices = @transform_3, window_bounds = array<i64: 36, 32>}, {pipeline_mode = #tpu.pipeline_mode<synchronous>, transform_indices = @transform_4, window_bounds = array<i64: 4, 1>}, {transform_indices = @transform_5, window_bounds = array<i64: 4, 512>}]} {
    %0 = tpu.iota {dimensions = array<i32: 1>} : vector<1x512xi32>
    %c255_i32 = arith.constant 255 : i32
    %1 = vector.broadcast %c255_i32 : i32 to vector<1x512xi32>
    %2 = arith.andi %0, %1 : vector<1x512xi32>
    %c15_i32 = arith.constant 15 : i32
    %3 = vector.broadcast %c15_i32 : i32 to vector<1x512xi32>
    %4 = arith.andi %2, %3 : vector<1x512xi32>
    %c16_i32 = arith.constant 16 : i32
    %5 = vector.broadcast %c16_i32 : i32 to vector<1x512xi32>
    %6 = arith.cmpi sge, %2, %5 : vector<1x512xi32>
    %c240_i32 = arith.constant 240 : i32
    %7 = vector.broadcast %c240_i32 : i32 to vector<1x512xi32>
    %8 = arith.cmpi slt, %2, %7 : vector<1x512xi32>
    %c1_i32 = arith.constant 1 : i32
    %9 = vector.broadcast %c1_i32 : i32 to vector<1x512xi32>
    %10 = arith.cmpi sge, %4, %9 : vector<1x512xi32>
    %c15_i32_0 = arith.constant 15 : i32
    %11 = vector.broadcast %c15_i32_0 : i32 to vector<1x512xi32>
    %12 = arith.cmpi slt, %4, %11 : vector<1x512xi32>
    %13 = arith.andi %6, %10 : vector<1x512xi1>
    %14 = arith.andi %6, %12 : vector<1x512xi1>
    %15 = arith.andi %8, %10 : vector<1x512xi1>
    %16 = arith.andi %8, %12 : vector<1x512xi1>
    %c0 = arith.constant 0 : index
    %c0_1 = arith.constant 0 : index
    %17 = vector.load %arg1[%c0, %c0_1] : memref<4x512xf32, #tpu.memory_space<vmem>>, vector<4x512xf32>
    %c17_i32 = arith.constant 17 : i32
    %18 = tpu.dynamic_rotate %17 by %c17_i32 dim 1 : vector<4x512xf32>, i32 -> vector<4x512xf32>
    %cst = arith.constant 0.000000e+00 : f32
    %19 = vector.shape_cast %13 : vector<1x512xi1> to vector<1x512xi1>
    %20 = vector.broadcast %19 : vector<1x512xi1> to vector<4x512xi1>
    %21 = vector.broadcast %cst : f32 to vector<4x512xf32>
    %22 = arith.select %20, %18, %21 : vector<4x512xi1>, vector<4x512xf32>
    %c16_i32_2 = arith.constant 16 : i32
    %23 = tpu.dynamic_rotate %17 by %c16_i32_2 dim 1 : vector<4x512xf32>, i32 -> vector<4x512xf32>
    %cst_3 = arith.constant 0.000000e+00 : f32
    %24 = vector.shape_cast %6 : vector<1x512xi1> to vector<1x512xi1>
    %25 = vector.broadcast %24 : vector<1x512xi1> to vector<4x512xi1>
    %26 = vector.broadcast %cst_3 : f32 to vector<4x512xf32>
    %27 = arith.select %25, %23, %26 : vector<4x512xi1>, vector<4x512xf32>
    %c15_i32_4 = arith.constant 15 : i32
    %28 = tpu.dynamic_rotate %17 by %c15_i32_4 dim 1 : vector<4x512xf32>, i32 -> vector<4x512xf32>
    %cst_5 = arith.constant 0.000000e+00 : f32
    %29 = vector.shape_cast %14 : vector<1x512xi1> to vector<1x512xi1>
    %30 = vector.broadcast %29 : vector<1x512xi1> to vector<4x512xi1>
    %31 = vector.broadcast %cst_5 : f32 to vector<4x512xf32>
    %32 = arith.select %30, %28, %31 : vector<4x512xi1>, vector<4x512xf32>
    %c1_i32_6 = arith.constant 1 : i32
    %33 = tpu.dynamic_rotate %17 by %c1_i32_6 dim 1 : vector<4x512xf32>, i32 -> vector<4x512xf32>
    %cst_7 = arith.constant 0.000000e+00 : f32
    %34 = vector.shape_cast %10 : vector<1x512xi1> to vector<1x512xi1>
    %35 = vector.broadcast %34 : vector<1x512xi1> to vector<4x512xi1>
    %36 = vector.broadcast %cst_7 : f32 to vector<4x512xf32>
    %37 = arith.select %35, %33, %36 : vector<4x512xi1>, vector<4x512xf32>
    %c511_i32 = arith.constant 511 : i32
    %38 = tpu.dynamic_rotate %17 by %c511_i32 dim 1 : vector<4x512xf32>, i32 -> vector<4x512xf32>
    %cst_8 = arith.constant 0.000000e+00 : f32
    %39 = vector.shape_cast %12 : vector<1x512xi1> to vector<1x512xi1>
    %40 = vector.broadcast %39 : vector<1x512xi1> to vector<4x512xi1>
    %41 = vector.broadcast %cst_8 : f32 to vector<4x512xf32>
    %42 = arith.select %40, %38, %41 : vector<4x512xi1>, vector<4x512xf32>
    %c497_i32 = arith.constant 497 : i32
    %43 = tpu.dynamic_rotate %17 by %c497_i32 dim 1 : vector<4x512xf32>, i32 -> vector<4x512xf32>
    %cst_9 = arith.constant 0.000000e+00 : f32
    %44 = vector.shape_cast %15 : vector<1x512xi1> to vector<1x512xi1>
    %45 = vector.broadcast %44 : vector<1x512xi1> to vector<4x512xi1>
    %46 = vector.broadcast %cst_9 : f32 to vector<4x512xf32>
    %47 = arith.select %45, %43, %46 : vector<4x512xi1>, vector<4x512xf32>
    %c496_i32 = arith.constant 496 : i32
    %48 = tpu.dynamic_rotate %17 by %c496_i32 dim 1 : vector<4x512xf32>, i32 -> vector<4x512xf32>
    %cst_10 = arith.constant 0.000000e+00 : f32
    %49 = vector.shape_cast %8 : vector<1x512xi1> to vector<1x512xi1>
    %50 = vector.broadcast %49 : vector<1x512xi1> to vector<4x512xi1>
    %51 = vector.broadcast %cst_10 : f32 to vector<4x512xf32>
    %52 = arith.select %50, %48, %51 : vector<4x512xi1>, vector<4x512xf32>
    %c495_i32 = arith.constant 495 : i32
    %53 = tpu.dynamic_rotate %17 by %c495_i32 dim 1 : vector<4x512xf32>, i32 -> vector<4x512xf32>
    %cst_11 = arith.constant 0.000000e+00 : f32
    %54 = vector.shape_cast %16 : vector<1x512xi1> to vector<1x512xi1>
    %55 = vector.broadcast %54 : vector<1x512xi1> to vector<4x512xi1>
    %56 = vector.broadcast %cst_11 : f32 to vector<4x512xf32>
    %57 = arith.select %55, %53, %56 : vector<4x512xi1>, vector<4x512xf32>
    %58 = tpu.concatenate %22, %27, %32, %37, %17, %42, %47, %52, %57 in 0 : vector<4x512xf32>, vector<4x512xf32>, vector<4x512xf32>, vector<4x512xf32>, vector<4x512xf32>, vector<4x512xf32>, vector<4x512xf32>, vector<4x512xf32>, vector<4x512xf32> -> vector<36x512xf32>
    %c0_12 = arith.constant 0 : index
    %c0_13 = arith.constant 0 : index
    %59 = vector.load %arg2[%c0_12, %c0_13] : memref<32x36xf32, #tpu.memory_space<vmem>>, vector<32x36xf32>
    %cst_14 = arith.constant dense<0.000000e+00> : vector<32x512xf32>
    %60 = tpu.matmul %59, %58, %cst_14 {dimension_numbers = #tpu.dot_dimension_numbers<[1], [0], [0], [1], [0, 0, 1, 1], [], []>} : vector<32x36xf32>, vector<36x512xf32>, vector<32x512xf32> -> vector<32x512xf32>
    %c0_15 = arith.constant 0 : index
    %c0_16 = arith.constant 0 : index
    %61 = vector.load %arg3[%c0_15, %c0_16] : memref<32x1xf32, #tpu.memory_space<vmem>>, vector<32x1xf32>
    %62 = vector.broadcast %61 : vector<32x1xf32> to vector<32x512xf32>
    %63 = arith.addf %60, %62 : vector<32x512xf32>
    %cst_17 = arith.constant 5.000000e-01 : f32
    %64 = vector.broadcast %cst_17 : f32 to vector<32x512xf32>
    %65 = arith.mulf %63, %64 : vector<32x512xf32>
    %cst_18 = arith.constant 0.707106769 : f32
    %66 = vector.broadcast %cst_18 : f32 to vector<32x512xf32>
    %67 = arith.mulf %63, %66 : vector<32x512xf32>
    %68 = math.erf %67 : vector<32x512xf32>
    %cst_19 = arith.constant 1.000000e+00 : f32
    %69 = vector.broadcast %cst_19 : f32 to vector<32x512xf32>
    %70 = arith.addf %69, %68 : vector<32x512xf32>
    %71 = arith.mulf %65, %70 : vector<32x512xf32>
    %c0_20 = arith.constant 0 : index
    %c0_21 = arith.constant 0 : index
    %72 = vector.load %arg4[%c0_20, %c0_21] : memref<36x32xf32, #tpu.memory_space<vmem>>, vector<36x32xf32>
    %cst_22 = arith.constant dense<0.000000e+00> : vector<36x512xf32>
    %73 = tpu.matmul %72, %71, %cst_22 {dimension_numbers = #tpu.dot_dimension_numbers<[1], [0], [0], [1], [0, 0, 1, 1], [], []>} : vector<36x32xf32>, vector<32x512xf32>, vector<36x512xf32> -> vector<36x512xf32>
    %cst_23 = arith.constant 0.000000e+00 : f32
    %74 = vector.broadcast %cst_23 : f32 to vector<4x512xf32>
    %75 = vector.extract_strided_slice %73 {offsets = [0, 0], sizes = [4, 512], strides = [1, 1]} : vector<36x512xf32> to vector<4x512xf32>
    %c17_i32_24 = arith.constant 17 : i32
    %76 = tpu.dynamic_rotate %75 by %c17_i32_24 dim 1 : vector<4x512xf32>, i32 -> vector<4x512xf32>
    %cst_25 = arith.constant 0.000000e+00 : f32
    %77 = vector.shape_cast %13 : vector<1x512xi1> to vector<1x512xi1>
    %78 = vector.broadcast %77 : vector<1x512xi1> to vector<4x512xi1>
    %79 = vector.broadcast %cst_25 : f32 to vector<4x512xf32>
    %80 = arith.select %78, %76, %79 : vector<4x512xi1>, vector<4x512xf32>
    %81 = arith.addf %74, %80 : vector<4x512xf32>
    %82 = vector.extract_strided_slice %73 {offsets = [4, 0], sizes = [4, 512], strides = [1, 1]} : vector<36x512xf32> to vector<4x512xf32>
    %c16_i32_26 = arith.constant 16 : i32
    %83 = tpu.dynamic_rotate %82 by %c16_i32_26 dim 1 : vector<4x512xf32>, i32 -> vector<4x512xf32>
    %cst_27 = arith.constant 0.000000e+00 : f32
    %84 = vector.shape_cast %6 : vector<1x512xi1> to vector<1x512xi1>
    %85 = vector.broadcast %84 : vector<1x512xi1> to vector<4x512xi1>
    %86 = vector.broadcast %cst_27 : f32 to vector<4x512xf32>
    %87 = arith.select %85, %83, %86 : vector<4x512xi1>, vector<4x512xf32>
    %88 = arith.addf %81, %87 : vector<4x512xf32>
    %89 = vector.extract_strided_slice %73 {offsets = [8, 0], sizes = [4, 512], strides = [1, 1]} : vector<36x512xf32> to vector<4x512xf32>
    %c15_i32_28 = arith.constant 15 : i32
    %90 = tpu.dynamic_rotate %89 by %c15_i32_28 dim 1 : vector<4x512xf32>, i32 -> vector<4x512xf32>
    %cst_29 = arith.constant 0.000000e+00 : f32
    %91 = vector.shape_cast %14 : vector<1x512xi1> to vector<1x512xi1>
    %92 = vector.broadcast %91 : vector<1x512xi1> to vector<4x512xi1>
    %93 = vector.broadcast %cst_29 : f32 to vector<4x512xf32>
    %94 = arith.select %92, %90, %93 : vector<4x512xi1>, vector<4x512xf32>
    %95 = arith.addf %88, %94 : vector<4x512xf32>
    %96 = vector.extract_strided_slice %73 {offsets = [12, 0], sizes = [4, 512], strides = [1, 1]} : vector<36x512xf32> to vector<4x512xf32>
    %c1_i32_30 = arith.constant 1 : i32
    %97 = tpu.dynamic_rotate %96 by %c1_i32_30 dim 1 : vector<4x512xf32>, i32 -> vector<4x512xf32>
    %cst_31 = arith.constant 0.000000e+00 : f32
    %98 = vector.shape_cast %10 : vector<1x512xi1> to vector<1x512xi1>
    %99 = vector.broadcast %98 : vector<1x512xi1> to vector<4x512xi1>
    %100 = vector.broadcast %cst_31 : f32 to vector<4x512xf32>
    %101 = arith.select %99, %97, %100 : vector<4x512xi1>, vector<4x512xf32>
    %102 = arith.addf %95, %101 : vector<4x512xf32>
    %103 = vector.extract_strided_slice %73 {offsets = [16, 0], sizes = [4, 512], strides = [1, 1]} : vector<36x512xf32> to vector<4x512xf32>
    %104 = arith.addf %102, %103 : vector<4x512xf32>
    %105 = vector.extract_strided_slice %73 {offsets = [20, 0], sizes = [4, 512], strides = [1, 1]} : vector<36x512xf32> to vector<4x512xf32>
    %c511_i32_32 = arith.constant 511 : i32
    %106 = tpu.dynamic_rotate %105 by %c511_i32_32 dim 1 : vector<4x512xf32>, i32 -> vector<4x512xf32>
    %cst_33 = arith.constant 0.000000e+00 : f32
    %107 = vector.shape_cast %12 : vector<1x512xi1> to vector<1x512xi1>
    %108 = vector.broadcast %107 : vector<1x512xi1> to vector<4x512xi1>
    %109 = vector.broadcast %cst_33 : f32 to vector<4x512xf32>
    %110 = arith.select %108, %106, %109 : vector<4x512xi1>, vector<4x512xf32>
    %111 = arith.addf %104, %110 : vector<4x512xf32>
    %112 = vector.extract_strided_slice %73 {offsets = [24, 0], sizes = [4, 512], strides = [1, 1]} : vector<36x512xf32> to vector<4x512xf32>
    %c497_i32_34 = arith.constant 497 : i32
    %113 = tpu.dynamic_rotate %112 by %c497_i32_34 dim 1 : vector<4x512xf32>, i32 -> vector<4x512xf32>
    %cst_35 = arith.constant 0.000000e+00 : f32
    %114 = vector.shape_cast %15 : vector<1x512xi1> to vector<1x512xi1>
    %115 = vector.broadcast %114 : vector<1x512xi1> to vector<4x512xi1>
    %116 = vector.broadcast %cst_35 : f32 to vector<4x512xf32>
    %117 = arith.select %115, %113, %116 : vector<4x512xi1>, vector<4x512xf32>
    %118 = arith.addf %111, %117 : vector<4x512xf32>
    %119 = vector.extract_strided_slice %73 {offsets = [28, 0], sizes = [4, 512], strides = [1, 1]} : vector<36x512xf32> to vector<4x512xf32>
    %c496_i32_36 = arith.constant 496 : i32
    %120 = tpu.dynamic_rotate %119 by %c496_i32_36 dim 1 : vector<4x512xf32>, i32 -> vector<4x512xf32>
    %cst_37 = arith.constant 0.000000e+00 : f32
    %121 = vector.shape_cast %8 : vector<1x512xi1> to vector<1x512xi1>
    %122 = vector.broadcast %121 : vector<1x512xi1> to vector<4x512xi1>
    %123 = vector.broadcast %cst_37 : f32 to vector<4x512xf32>
    %124 = arith.select %122, %120, %123 : vector<4x512xi1>, vector<4x512xf32>
    %125 = arith.addf %118, %124 : vector<4x512xf32>
    %126 = vector.extract_strided_slice %73 {offsets = [32, 0], sizes = [4, 512], strides = [1, 1]} : vector<36x512xf32> to vector<4x512xf32>
    %c495_i32_38 = arith.constant 495 : i32
    %127 = tpu.dynamic_rotate %126 by %c495_i32_38 dim 1 : vector<4x512xf32>, i32 -> vector<4x512xf32>
    %cst_39 = arith.constant 0.000000e+00 : f32
    %128 = vector.shape_cast %16 : vector<1x512xi1> to vector<1x512xi1>
    %129 = vector.broadcast %128 : vector<1x512xi1> to vector<4x512xi1>
    %130 = vector.broadcast %cst_39 : f32 to vector<4x512xf32>
    %131 = arith.select %129, %127, %130 : vector<4x512xi1>, vector<4x512xf32>
    %132 = arith.addf %125, %131 : vector<4x512xf32>
    %c0_40 = arith.constant 0 : index
    %c0_41 = arith.constant 0 : index
    %133 = vector.load %arg5[%c0_40, %c0_41] : memref<4x1xf32, #tpu.memory_space<vmem>>, vector<4x1xf32>
    %134 = vector.broadcast %133 : vector<4x1xf32> to vector<4x512xf32>
    %135 = arith.addf %132, %134 : vector<4x512xf32>
    %c0_42 = arith.constant 0 : index
    %c0_43 = arith.constant 0 : index
    %136 = vector.load %arg6[%c0_42, %c0_43] : memref<4x512xf32, #tpu.memory_space<vmem>>, vector<4x512xf32>
    tpu.vector_store %arg6[%c0_42, %c0_43], %135 {strides = array<i32>} : memref<4x512xf32, #tpu.memory_space<vmem>>, vector<4x512xf32>,
    return
  }
  func.func @transform_0(%arg0: i32) -> (i32, i32) {
    %c0_i32 = arith.constant 0 : i32
    %c0_i32_0 = arith.constant 0 : i32
    return %c0_i32, %arg0 : i32, i32
  }
  func.func @transform_1(%arg0: i32) -> (i32, i32) {
    %c0_i32 = arith.constant 0 : i32
    %c0_i32_0 = arith.constant 0 : i32
    %c0_i32_1 = arith.constant 0 : i32
    return %c0_i32, %c0_i32_0 : i32, i32
  }
  func.func @transform_2(%arg0: i32) -> (i32, i32) {
    %c0_i32 = arith.constant 0 : i32
    %c0_i32_0 = arith.constant 0 : i32
    %c0_i32_1 = arith.constant 0 : i32
    return %c0_i32, %c0_i32_0 : i32, i32
  }
  func.func @transform_3(%arg0: i32) -> (i32, i32) {
    %c0_i32 = arith.constant 0 : i32
    %c0_i32_0 = arith.constant 0 : i32
    %c0_i32_1 = arith.constant 0 : i32
    return %c0_i32, %c0_i32_0 : i32, i32
  }
  func.func @transform_4(%arg0: i32) -> (i32, i32) {
    %c0_i32 = arith.constant 0 : i32
    %c0_i32_0 = arith.constant 0 : i32
    %c0_i32_1 = arith.constant 0 : i32
    return %c0_i32, %c0_i32_0 : i32, i32
  }
  func.func @transform_5(%arg0: i32) -> (i32, i32) {
    %c0_i32 = arith.constant 0 : i32
    %c0_i32_0 = arith.constant 0 : i32
    return %c0_i32, %arg0 : i32, i32
  }
}

</mosaic_0001>

<bundles_post_ra>
// kernel: mlp3_forward.1
= control target key start
LH: loop header
LB: loop body
LE: loop exit
PB: predicated region body
PF: predicated region fallthrough
CT: control target
= control target key end

     0   :  { %s1834_s22 = smov 15   ;;  %s1835_s23 = smov 1   ;;  %v20_v48 = vlaneseq  ;;  %vm3262_vm10 = vcmask 1043456   ;;  %s3246_s0 = inlined_call_operand.vmem [shape: f32[4,512], index: 0, kind: input, shape index: {}]   ;;  %s3247_s2 = inlined_call_operand.vmem [shape: f32[32,1], index: 2, kind: input, shape index: {}]   ;;  %s3248_s1 = inlined_call_operand.vmem [shape: f32[32,36], index: 1, kind: input, shape index: {}]   ;;  %s3249_s3 = inlined_call_operand.vmem [shape: f32[36,32], index: 3, kind: input, shape index: {}]   ;;  %s3250_s4 = inlined_call_operand.vmem [shape: f32[4,1], index: 4, kind: input, shape index: {}]   ;;  %s3251_s5 = inlined_call_operand.vmem [shape: f32[4,512], index: 5, kind: output, shape index: {}]  }
   0x1   :  { %v1875_v0 = vld [vmem:[%s3246_s0] sm:$0xff]  ;;  %v1880_v1 = vld [vmem:[%s3246_s0 + $0x8] sm:$0xff]  ;;  %s1833_s0 = smov 16   ;;  %s1836_s24 = smov 127  }
   0x2   :  { %69 = vst [vmem:[#allocation1] ss:$2 sm:$0xff] %v1875_v0  ;;  %s1837_s25 = smov 113   ;;  %s1838_s26 = smov 112   ;;  %v1954_v49 = vand.u32 127, %v20_v48 }
   0x3   :  { %71 = vst [vmem:[#allocation1 + $0x10] ss:$2 sm:$0xff] %v1880_v1  ;;  %s1839_s27 = smov 111   ;;  %s1840_s28 = smov 17  }
   0x4   :  { %3309 = vst [vmem:[#allocation2_spill] sm:$0xff] %v1954_v49  ;;  %v24_v52 = vadd.s32 384, %v1954_v49  ;;  %v1970_v58 = vadd.s32 256, %v1954_v49  ;;  %v22_v60 = vadd.s32 128, %v1954_v49  ;;  %v25_v61 = vand.u32 255, %v1954_v49 }
   0x5   :  { %vm3253_vm0 = vcmp.lt.s32.totalorder %v1954_v49, 127  ;;  %vm3258_vm1 = vcmp.lt.s32.totalorder %v1954_v49, 15  ;;  %vm3265_vm3 = vcmp.lt.s32.totalorder %v1954_v49, 1  ;;  %vm3264_vm5 = vcmp.lt.s32.totalorder %v1954_v49, 113 }
   0x6   :  { %v28_v54 = vand.u32 255, %v24_v52  ;;  %vm3263_vm6 = vcmp.lt.s32.totalorder %v1954_v49, 112  ;;  %vm3260_vm7 = vcmp.lt.s32.totalorder %v1954_v49, 16  ;;  %vm3256_vm9 = vcmp.lt.s32.totalorder %v1954_v49, 111 }
   0x8   :  { %v1965_v56 = vand.u32 15, %v28_v54  ;;  %vm1988_vm4 = vcmp.lt.s32.totalorder %v28_v54, 240 }
   0x9   :  { %v1884_v2 = vld.sshfl [vmem:[#allocation1] sm:$0xff pattern:$0x75316420]  ;;  %v1886_v3 = vld.sshfl [vmem:[#allocation1 + $0x8] sm:$0xff pattern:$0x75316420] }
   0xa   :  { %v1888_v4 = vld.sshfl [vmem:[#allocation1 + $0x10] sm:$0xff pattern:$0x75316420]  ;;  %v1890_v5 = vld.sshfl [vmem:[#allocation1 + $0x18] sm:$0xff pattern:$0x75316420] }
   0xb   :  { %105 = vst [vmem:[#allocation1] ss:$2 sm:$0xff] %v1875_v0  ;;  %v1793_v26 = vpack.i.bf16 %v1888_v4, %v1886_v3  ;;  %vm3255_vm2 = vcmp.ge.s32.totalorder %v1965_v56, 1  ;;  %v1986_v3 = vand.u32 15, %v25_v61  ;;  %v3312_v4 = vmov 0 }
   0xc   :  { %107 = vst [vmem:[#allocation1 + $0x10] ss:$2 sm:$0xff] %v1880_v1  ;;  %v3313_v4 = vsel %vm1988_vm4, 4294967295, %v3312_v4  ;;  %vm3254_vm8 = vcmp.lt.s32.totalorder %v1965_v56, 15  ;;  %vm2043_vm13 = vmand %vm1988_vm4, %vm3255_vm2 }
   0xd   :  { %3310 = vst [vmem:[#allocation3_spill] sm:$0xff] %v1965_v56  ;;  %vm3252_vm11 = vcmp.lt.s32.totalorder %v1986_v3, 15  ;;  %vm2028_vm12 = vmand %vm1988_vm4, %vm3254_vm8 }
   0xe   :  { %3311 = vst [vmem:[#allocation4_spill] sm:$0xff] %v1986_v3 }
   0xf   :  { %3314 = vst [vmem:[#allocation5_spill] sm:$0xff] %v3313_v4 }
  0x12   :  { %v1894_v6 = vld.sshfl [vmem:[#allocation1] sm:$0xff pattern:$0x75316420]  ;;  %v109_v7 = vld.sshfl [vmem:[#allocation1 + $0x8] sm:$0xff pattern:$0x75316420] }
  0x13   :  { %v110_v8 = vld.sshfl [vmem:[#allocation1 + $0x10] sm:$0xff pattern:$0x75316420]  ;;  %v111_v9 = vld.sshfl [vmem:[#allocation1 + $0x18] sm:$0xff pattern:$0x75316420] }
  0x14   :  { %141 = vst [vmem:[#allocation1] ss:$2 sm:$0xff] %v1875_v0  ;;  %v1758_v10 = vpack.i.bf16 %v110_v8, %v109_v7 }
  0x15   :  { %143 = vst [vmem:[#allocation1 + $0x10] ss:$2 sm:$0xff] %v1880_v1 }
  0x16   :  { %1759 = vrot.lane.b32.xlu2 %v1758_v10, %s1833_s0 }
  0x1b   :  { %v145_v11 = vld.sshfl [vmem:[#allocation1 + $0x8] sm:$0xff pattern:$0x75316420]  ;;  %v1899_v12 = vld.sshfl [vmem:[#allocation1] sm:$0xff pattern:$0x75316420] }
  0x1c   :  { %v146_v13 = vld.sshfl [vmem:[#allocation1 + $0x10] sm:$0xff pattern:$0x75316420]  ;;  %177 = vst [vmem:[#allocation1] ss:$2 sm:$0xff] %v1875_v0 }
  0x1d   :  { %v1763_v14 = vpack.i.bf16 %v146_v13, %v145_v11  ;;  %v147_v15 = vld.sshfl [vmem:[#allocation1 + $0x18] sm:$0xff pattern:$0x75316420]  ;;  %v1841_v13 = vmov 0  }
  0x1e   :  { %158 = vrot.lane.b32.xlu1 %v147_v15, %s1834_s22  ;;  %179 = vst [vmem:[#allocation1 + $0x10] ss:$2 sm:$0xff] %v1880_v1  ;;  %122 = vrot.lane.b32.xlu2 %v111_v9, %s1833_s0 }
  0x1f   :  { %1764 = vrot.lane.b32.xlu0 %v1763_v14, %s1834_s22  ;;  %1799 = vset.pattern.permute.xlu1 %v1841_v13  ;;  %v439_v14 = vld [vmem:[%s3247_s2 + $0x10] sm:$0xff] }
  0x20   :  { %1798 = vset.pattern.permute.xlu0 %v1841_v13  ;;  %1800 = vset.pattern.permute.xlu2 %v1841_v13  ;;  %v3326_v13 = vmov 0 }
  0x23   :  { %v180_v16 = vld.sshfl [vmem:[#allocation1] sm:$0xff pattern:$0x75316420]  ;;  %v181_v17 = vld.sshfl [vmem:[#allocation1 + $0x8] sm:$0xff pattern:$0x75316420] }
  0x24   :  { %213 = vst [vmem:[#allocation1] ss:$2 sm:$0xff] %v1875_v0 }
  0x25   :  { %v182_v18 = vld.sshfl [vmem:[#allocation1 + $0x10] sm:$0xff pattern:$0x75316420]  ;;  %v183_v19 = vld.sshfl [vmem:[#allocation1 + $0x18] sm:$0xff pattern:$0x75316420] }
  0x26   :  { %v1768_v20 = vpack.i.bf16 %v182_v18, %v181_v17  ;;  %194 = vrot.lane.b32.xlu1 %v183_v19, %s1835_s23  ;;  %215 = vst [vmem:[#allocation1 + $0x10] ss:$2 sm:$0xff] %v1880_v1  ;;  %v3317_v17 = vmov 0 }
  0x27   :  { %v3318_v17 = vsel %vm2028_vm12, 4294967295, %v3317_v17 }
  0x28   :  { %1769 = vrot.lane.b32.xlu0 %v1768_v20, %s1835_s23  ;;  %3319 = vst [vmem:[#allocation8_spill] sm:$0xff] %v3318_v17 }
  0x2b   :  { %v217_v21 = vld.sshfl [vmem:[#allocation1 + $0x8] sm:$0xff pattern:$0x75316420]  ;;  %v216_v22 = vld.sshfl [vmem:[#allocation1] sm:$0xff pattern:$0x75316420] }
  0x2c   :  { %249 = vst [vmem:[#allocation1] ss:$2 sm:$0xff] %v1875_v0 }
  0x2d   :  { %v218_v23 = vld.sshfl [vmem:[#allocation1 + $0x10] sm:$0xff pattern:$0x75316420]  ;;  %v219_v24 = vld.sshfl [vmem:[#allocation1 + $0x18] sm:$0xff pattern:$0x75316420] }
  0x2e   :  { %v1773_v25 = vpack.i.bf16 %v218_v23, %v216_v22  ;;  %251 = vst [vmem:[#allocation1 + $0x10] ss:$2 sm:$0xff] %v1880_v1  ;;  %v3320_v22 = vmov 0 }
  0x2f   :  { %v3321_v22 = vsel %vm2043_vm13, 4294967295, %v3320_v22 }
  0x30   :  { %1774 = vrot.lane.b32.xlu2 %v1773_v25, %s1836_s24  ;;  %230 = vrot.lane.b32.xlu0 %v219_v24, %s1836_s24  ;;  %3322 = vst [vmem:[#allocation9_spill] sm:$0xff] %v3321_v22 }
  0x33   :  { %v252_v27 = vld.sshfl [vmem:[#allocation1] sm:$0xff pattern:$0x75316420]  ;;  %v253_v28 = vld.sshfl [vmem:[#allocation1 + $0x8] sm:$0xff pattern:$0x75316420] }
  0x34   :  { %285 = vst [vmem:[#allocation1] ss:$2 sm:$0xff] %v1875_v0 }
  0x35   :  { %v255_v29 = vld.sshfl [vmem:[#allocation1 + $0x18] sm:$0xff pattern:$0x75316420]  ;;  %v254_v30 = vld.sshfl [vmem:[#allocation1 + $0x10] sm:$0xff pattern:$0x75316420] }
  0x36   :  { %v1778_v31 = vpack.i.bf16 %v254_v30, %v252_v27  ;;  %287 = vst [vmem:[#allocation1 + $0x10] ss:$2 sm:$0xff] %v1880_v1 }
  0x38   :  { %266 = vrot.lane.b32.xlu2 %v255_v29, %s1837_s25  ;;  %1779 = vrot.lane.b32.xlu1 %v1778_v31, %s1837_s25 }
  0x3b   :  { %v288_v32 = vld.sshfl [vmem:[#allocation1] sm:$0xff pattern:$0x75316420]  ;;  %v289_v33 = vld.sshfl [vmem:[#allocation1 + $0x8] sm:$0xff pattern:$0x75316420] }
  0x3c   :  { %321 = vst [vmem:[#allocation1] ss:$2 sm:$0xff] %v1875_v0 }
  0x3d   :  { %v290_v34 = vld.sshfl [vmem:[#allocation1 + $0x10] sm:$0xff pattern:$0x75316420]  ;;  %v291_v35 = vld.sshfl [vmem:[#allocation1 + $0x18] sm:$0xff pattern:$0x75316420] }
  0x3e   :  { %v1783_v36 = vpack.i.bf16 %v291_v35, %v288_v32  ;;  %323 = vst [vmem:[#allocation1 + $0x10] ss:$2 sm:$0xff] %v1880_v1  ;;  %v1788_v39 = vpack.i.bf16 %v289_v33, %v290_v34 }
  0x40   :  { %1784 = vrot.lane.b32.xlu0 %v1783_v36, %s1838_s26 }
  0x43   :  { %v324_v37 = vld.sshfl [vmem:[#allocation1] sm:$0xff pattern:$0x75316420]  ;;  %v325_v38 = vld.sshfl [vmem:[#allocation1 + $0x8] sm:$0xff pattern:$0x75316420] }
  0x44   :  { %332 = vrot.lane.b32.xlu1 %v324_v37, %s1839_s27  ;;  %381 = vst [vmem:[#allocation1] ss:$2 sm:$0xff] %v1875_v0  ;;  %v27_v0 = vand.u32 255, %v1970_v58  ;;  %v3323_v37 = vmov 0 }
  0x45   :  { %v327_v40 = vld.sshfl [vmem:[#allocation1 + $0x18] sm:$0xff pattern:$0x75316420]  ;;  %v326_v41 = vld.sshfl [vmem:[#allocation1 + $0x10] sm:$0xff pattern:$0x75316420] }
  0x46   :  { %338 = vrot.lane.b32.xlu2 %v327_v40, %s1839_s27  ;;  %383 = vst [vmem:[#allocation1 + $0x10] ss:$2 sm:$0xff] %v1880_v1  ;;  %v2012_v11 = vand.u32 15, %v27_v0 }
  0x48   :  { %1789 = vrot.lane.b32.xlu0 %v1788_v39, %s1838_s26  ;;  %3315 = vst [vmem:[#allocation6_spill] sm:$0xff] %v2012_v11 }
  0x4c   :  { %336 = vrot.lane.b32.xlu1 %v326_v41, %s1839_s27 }
  0x4d   :  { %v387_v36 = vld.sshfl [vmem:[#allocation1 + $0x18] sm:$0xff pattern:$0x75316420] }
  0x4e   :  { %188 = vrot.lane.b32.xlu2 %v180_v16, %s1835_s23 }
  0x50   :  { %1794 = vrot.lane.b32.xlu0 %v1793_v26, %s1840_s28 }
  0x54   :  { %86 = vrot.lane.b32.xlu1 %v1890_v5, %s1840_s28 }
  0x56   :  { %334 = vrot.lane.b32.xlu2 %v325_v38, %s1839_s27 }
  0x58   :  { %226 = vrot.lane.b32.xlu0 %v217_v21, %s1836_s24 }
  0x5c   :  { %262 = vrot.lane.b32.xlu1 %v253_v28, %s1837_s25 }
  0x5e   :  { %80 = vrot.lane.b32.xlu2 %v1884_v2, %s1840_s28  ;;  %v26_v2 = vand.u32 255, %v22_v60 }
  0x60   :  { %116 = vrot.lane.b32.xlu0 %v1894_v6, %s1833_s0  ;;  %v2019_v15 = vand.u32 15, %v26_v2  ;;  %vm2074_vm14 = vcmp.lt.s32.totalorder %v26_v2, 240 }
  0x61   :  { %v3324_v37 = vsel %vm2074_vm14, 4294967295, %v3323_v37 }
  0x62   :  { %3316 = vst [vmem:[#allocation7_spill] sm:$0xff] %v2019_v15  ;;  %vm3266_vm15 = vcmp.lt.s32.totalorder %v2019_v15, 15 }
  0x63   :  { %3325 = vst [vmem:[#allocation10_spill] sm:$0xff] %v3324_v37 }
  0x64   :  { %152 = vrot.lane.b32.xlu1 %v1899_v12, %s1834_s22 }
  0x6c   :  { %453 = vperm.xlu1 %1799, %v439_v14  }
  0x70   :  { %v1942_v42 = vpop.permute.xlu2 %1759 }
  0x71   :  { %v1762_v33 = vunpack.i.h.bf16 %v1942_v42  ;;  %v1761_v48 = vunpack.i.l.bf16 %v1942_v42  ;;  %v438_v42 = vld [vmem:[%s3247_s2 + $0x8] sm:$0xff] }
  0x72   :  { %448 = vperm.xlu2 %1800, %v438_v42  }
  0x78   :  { %v1944_v43 = vpop.permute.xlu2 %122 }
  0x8a   :  { %v1946_v44 = vpop.permute.xlu2 %1774 }
  0x8b   :  { %v1776_v62 = vunpack.i.l.bf16 %v1946_v44  ;;  %v1777_v19 = vunpack.i.h.bf16 %v1946_v44 }
  0x90   :  { %v1952_v47 = vpop.permute.xlu1 %158 }
  0x91   :  { %v1948_v45 = vpop.permute.xlu0 %1764 }
  0x92   :  { %v1950_v46 = vpop.permute.xlu2 %266  ;;  %v1767_v1 = vunpack.i.h.bf16 %v1948_v45  ;;  %v1766_v60 = vunpack.i.l.bf16 %v1948_v45 }
  0x94   :  { %v161_v25 = vsel %vm3258_vm1, %v1767_v1, %v1952_v47 }
  0x95   :  { %v176_v54 = vsel %vm3254_vm8, %v161_v25, 0.0 }
  0x98   :  { %v1961_v53 = vpop.permute.xlu1 %194 }
  0x9a   :  { %v1956_v50 = vpop.permute.xlu0 %1769 }
  0x9b   :  { %v1772_v63 = vunpack.i.h.bf16 %v1956_v50  ;;  %v1771_v29 = vunpack.i.l.bf16 %v1956_v50 }
  0x9d   :  { %v197_v8 = vsel %vm3265_vm3, %v1772_v63, %v1961_v53 }
  0x9e   :  { %v212_v20 = vsel %vm3255_vm2, %v197_v8, 0.0  ;;  %vm2119_vm2 = vcmp.ge.s32.totalorder %v27_v0, 16 }
  0x9f   :  { %v376_v34 = vrot.slane %v212_v20, 4 }
  0xa0   :  { %v1958_v51 = vpop.permute.xlu2 %338 }
  0xa2   :  { %v1963_v55 = vpop.permute.xlu0 %230 }
  0xa3   :  { %v236_v5 = vsel %vm3253_vm0, %v1963_v55, %v1776_v62  ;;  %v233_v38 = vsel %vm3253_vm0, %v1777_v19, %v1963_v55  ;;  %v437_v55 = vld [vmem:[%s3247_s2] sm:$0xff]  ;;  %vm3257_vm0 = vcmp.lt.s32.totalorder %v2012_v11, 15 }
  0xa4   :  { %v248_v16 = vsel %vm3254_vm8, %v236_v5, 0.0  ;;  %v198_v5 = vsel %vm3265_vm3, %v1771_v29, %v1772_v63  ;;  %v247_v8 = vsel %vm3257_vm0, %v233_v38, 0.0  ;;  %vm2111_vm8 = vmand %vm2074_vm14, %vm3266_vm15  ;;  %443 = vperm.xlu1 %1799, %v437_v55   ;;  %v125_v38 = vsel %vm3260_vm7, %v1762_v33, %v1944_v43 }
  0xa5   :  { %v399_v30 = vrot.slane %v248_v16, 4  ;;  %v3327_v13 = vsel %vm2111_vm8, 4294967295, %v3326_v13  ;;  %v3329_v16 = vmov 0 }
  0xa6   :  { %3328 = vst [vmem:[#allocation11_spill] sm:$0xff] %v3327_v13  ;;  %v3330_v16 = vsel %vm2119_vm2, 4294967295, %v3329_v16 }
  0xa7   :  { %v428_v2 = vsel %vm3262_vm10, %v387_v36, %v399_v30  ;;  %3331 = vst [vmem:[#allocation12_spill] sm:$0xff] %v3330_v16 }
  0xa8   :  { %v1967_v57 = vpop.permute.xlu2 %188 }
  0xaa   :  { %v1972_v59 = vpop.permute.xlu1 %1779 }
  0xab   :  { %v1781_v6 = vunpack.i.l.bf16 %v1972_v59  ;;  %v1782_v39 = vunpack.i.h.bf16 %v1972_v59  ;;  %v434_v59 = vld [vmem:[%s3248_s1 + $0x8] sm:$0xff] }
  0xad   :  { %v272_v23 = vsel %vm3264_vm5, %v1950_v46, %v1781_v6  ;;  %v269_v20 = vsel %vm3264_vm5, %v1782_v39, %v1950_v46 }
  0xae   :  { %v284_v35 = vsel %vm2043_vm13, %v272_v23, 0.0  ;;  %v126_v23 = vsel %vm3260_vm7, %v1761_v48, %v1762_v33  ;;  %vm3338_vm7 = vcmp.ge.s32.totalorder %v1965_v56, 1 }
  0xaf   :  { %v139_v36 = vsel %vm2119_vm2, %v126_v23, 0.0 }
  0xb0   :  { %v335_v12 = vpop.permute.xlu2 %334 }
  0xb2   :  { %v1998_v7 = vpop.permute.xlu0 %1784 }
  0xb3   :  { %v1787_v9 = vunpack.i.h.bf16 %v1998_v7  ;;  %v1786_v10 = vunpack.i.l.bf16 %v1998_v7  ;;  %v440_v7 = vld [vmem:[%s3247_s2 + $0x18] sm:$0xff] }
  0xb4   :  { %458 = vperm.xlu0 %1798, %v440_v7  }
  0xb5   :  { %v308_v18 = vsel %vm3263_vm6, %v1787_v9, %v1786_v10 }
  0xb6   :  { %v333_v21 = vpop.permute.xlu1 %332  ;;  %v320_v24 = vsel %vm1988_vm4, %v308_v18, 0.0  ;;  %v424_v18 = vsel %vm3262_vm10, %v176_v54, %v376_v34 }
  0xb7   :  { %v343_v26 = vsel %vm3256_vm9, %v333_v21, %v335_v12  ;;  %v344_v27 = vsel %vm3256_vm9, %v1958_v51, %v333_v21  ;;  %v411_v28 = vrot.slane %v320_v24, 4  ;;  %v398_v24 = vrot.slane %v247_v8, 4 }
  0xb8   :  { %v353_v31 = vsel %vm3252_vm11, %v343_v26, 0.0  ;;  %v356_v32 = vsel %vm2028_vm12, %v344_v27, 0.0  ;;  %vm3259_vm11 = vcmp.ge.s32.totalorder %v2012_v11, 1  ;;  %v386_v27 = vld.sshfl [vmem:[#allocation1 + $0x10] sm:$0xff pattern:$0x75316420] }
  0xb9   :  { %1693 = vmatpush.msk.msra.mxu0 %vm3262_vm10, %v353_v31  ;;  %1708 = vmatpush.msk.msra.mxu3 %vm3262_vm10, %v356_v32  ;;  %v432_v41 = vsel %vm3262_vm10, %v284_v35, %v411_v28  ;;  %v211_v0 = vsel %vm3259_vm11, %v198_v5, 0.0  ;;  %v283_v26 = vsel %vm3259_vm11, %v269_v20, 0.0  ;;  %v3335_v35 = vmov 0 }
  0xba   :  { %v2084_v40 = vpop.permute.xlu0 %1789  ;;  %v375_v31 = vrot.slane %v211_v0, 4  ;;  %vm3369_vm12 = vcmask 293888  }
  0xbb   :  { %v1791_v52 = vunpack.i.l.bf16 %v2084_v40  ;;  %585 = vmatpush.msra.mxu3 %v432_v41  ;;  %v427_v41 = vsel %vm3262_vm10, %v386_v27, %v398_v24  ;;  %v1792_v55 = vunpack.i.h.bf16 %v2084_v40 }
  0xbd   :  { %586 = vmatpush.msra.mxu3 %v428_v2  ;;  %v305_v14 = vsel %vm3263_vm6, %v1791_v52, %v1787_v9 }
  0xbe   :  { %v337_v63 = vpop.permute.xlu1 %336  ;;  %v410_v21 = vrot.slane %v305_v14, 4  ;;  %v363_v14 = vrot.slane %v139_v36, 4 }
  0xbf   :  { %587 = vmatpush.msra.mxu3 %v424_v18  ;;  %v342_v9 = vsel %vm3256_vm9, %v335_v12, %v337_v63  ;;  %v341_v58 = vsel %vm3256_vm9, %v337_v63, %v1958_v51  ;;  %vm2148_vm9 = vmand %vm2119_vm2, %vm3257_vm0  ;;  %v3332_v51 = vmov 0  ;;  %v162_v12 = vsel %vm3258_vm1, %v1766_v60, %v1767_v1  ;;  %v2200_v18 = vld [vmem:[%s3248_s1] sm:$0xff] }
  0xc0   :  { %v354_v46 = vsel %vm2111_vm8, %v342_v9, 0.0  ;;  %v355_v25 = vsel %vm3257_vm0, %v341_v58, 0.0  ;;  %v3333_v51 = vsel %vm2148_vm9, 4294967295, %v3332_v51  ;;  %v431_v30 = vsel %vm3262_vm10, %v283_v26, %v410_v21  ;;  %vm2174_vm1 = vmand %vm2119_vm2, %vm3259_vm11 }
  0xc1   :  { %3334 = vst [vmem:[#allocation13_spill] sm:$0xff] %v3333_v51  ;;  %1698 = vmatpush.msk.msra.mxu1 %vm3262_vm10, %v354_v46  ;;  %1703 = vmatpush.msk.msra.mxu2 %vm3262_vm10, %v355_v25  ;;  %vm3261_vm0 = vcmp.lt.s32.totalorder %v1954_v49, 17  ;;  %v175_v1 = vsel %vm2148_vm9, %v162_v12, 0.0  ;;  %v3336_v35 = vsel %vm2174_vm1, 4294967295, %v3335_v35  ;;  %v364_v63 = vrot.slane %v125_v38, 4  ;;  %vm3370_vm8 = vmmov %vm3369_vm12 }
  0xc2   :  { %v2162_v28 = vpop.permute.xlu0 %1794  ;;  %3337 = vst [vmem:[#allocation14_spill] sm:$0xff] %v3336_v35  ;;  %v423_v5 = vsel %vm3262_vm10, %v175_v1, %v375_v31  ;;  %vm3269_vm11 = vcmask 293888   ;;  %v306_v21 = vsel %vm3263_vm6, %v1792_v55, %v1791_v52  ;;  %v307_v52 = vsel %vm3263_vm6, %v1786_v10, %v1792_v55 }
  0xc3   :  { %v1797_v32 = vunpack.i.h.bf16 %v2162_v28  ;;  %v1796_v34 = vunpack.i.l.bf16 %v2162_v28  ;;  %556 = vmatpush.msra.mxu2 %v431_v30  ;;  %v318_v24 = vsel %vm2074_vm14, %v306_v21, 0.0  ;;  %vm3267_vm6 = vcmp.ge.s32.totalorder %v1986_v3, 1 }
  0xc4   :  { %v200_v10 = vsel %vm3265_vm3, %v1961_v53, %v1967_v57  ;;  %v408_v25 = vrot.slane %v307_v52, 4  ;;  %v409_v12 = vrot.slane %v318_v24, 4  ;;  %v199_v53 = vsel %vm3265_vm3, %v1967_v57, %v1771_v29 }
  0xc5   :  { %557 = vmatpush.msra.mxu2 %v427_v41  ;;  %v90_v54 = vsel %vm3261_vm0, %v1796_v34, %v1797_v32  ;;  %v209_v50 = vsel %vm3267_vm6, %v200_v10, 0.0  ;;  %vm2273_vm3 = vcmp.ge.s32.totalorder %v25_v61, 16  ;;  %v3347_v57 = vmov 0 }
  0xc6   :  { %v2189_v2 = vpop.permute.xlu1 %86  ;;  %v103_v8 = vsel %vm2174_vm1, %v90_v54, 0.0  ;;  %v3348_v57 = vsel %vm2273_vm3, 4294967295, %v3347_v57  ;;  %v81_v54 = vpop.permute.xlu2 %80 }
  0xc7   :  { %v89_v33 = vsel %vm3261_vm0, %v1797_v32, %v2189_v2  ;;  %558 = vmatpush.msra.mxu2 %v423_v5  ;;  %v419_v40 = vsel %vm3262_vm10, %v103_v8, %v363_v14  ;;  %vm3339_vm0 = vcmp.lt.s32.totalorder %v1954_v49, 127  ;;  %v384_v32 = vld.sshfl [vmem:[#allocation1] sm:$0xff pattern:$0x75316420]  ;;  %3349 = vst [vmem:[#allocation16_spill] sm:$0xff] %v3348_v57 }
  0xc8   :  { %v104_v20 = vsel %vm3338_vm7, %v89_v33, 0.0  ;;  %vm3340_vm7 = vmmov %vm3339_vm0 }
  0xc9   :  { %559 = vmatpush.msra.mxu2 %v419_v40  ;;  %v420_v9 = vsel %vm3262_vm10, %v104_v20, %v364_v63  ;;  %vm3268_vm10 = vcmp.ge.s32.totalorder %v2019_v15, 1  ;;  %v373_v63 = vrot.slane %v209_v50, 4 }
  0xca   :  { %v227_v58 = vpop.permute.xlu0 %226  ;;  %1704 = vmatmul.msk.f32.vlgmr.msra.gmra.mxu2 %vm3269_vm11, %v2200_v18  ;;  %588 = vmatpush.msra.mxu3 %v420_v9  ;;  %v210_v41 = vsel %vm3268_vm10, %v199_v53, 0.0 }
  0xcb   :  { %v234_v0 = vsel %vm3339_vm0, %v227_v58, %v1777_v19  ;;  %v235_v23 = vsel %vm3340_vm7, %v1776_v62, %v227_v58  ;;  %1709 = vmatmul.msk.f32.vlgmr.msra.gmra.mxu3 %vm3269_vm11, %v2200_v18  ;;  %vm3341_vm0 = vcmp.lt.s32.totalorder %v1986_v3, 15  ;;  %vm2235_vm7 = vmand %vm2074_vm14, %vm3268_vm10  ;;  %v3342_v62 = vmov 0 }
  0xcc   :  { %v245_v19 = vsel %vm3341_vm0, %v235_v23, 0.0  ;;  %v246_v44 = vsel %vm3266_vm15, %v234_v0, 0.0  ;;  %v3343_v62 = vsel %vm2235_vm7, 4294967295, %v3342_v62  ;;  %vm3345_vm0 = vcmask 1043456  }
  0xcd   :  { %3344 = vst [vmem:[#allocation15_spill] sm:$0xff] %v3343_v62  ;;  %v396_v26 = vrot.slane %v245_v19, 4  ;;  %v397_v27 = vrot.slane %v246_v44, 4  ;;  %v374_v33 = vrot.slane %v210_v41, 4  ;;  %v436_v44 = vld [vmem:[%s3248_s1 + $0x18] sm:$0xff] }
  0xce   :  { %v263_v46 = vpop.permute.xlu1 %262 }
  0xcf   :  { %v270_v30 = vsel %vm3264_vm5, %v263_v46, %v1782_v39  ;;  %v271_v31 = vsel %vm3264_vm5, %v1781_v6, %v263_v46  ;;  %v385_v39 = vld.sshfl [vmem:[#allocation1 + $0x8] sm:$0xff pattern:$0x75316420]  ;;  %vm3346_vm5 = vmmov %vm3345_vm0 }
  0xd0   :  { %v281_v1 = vsel %vm3267_vm6, %v271_v31, 0.0  ;;  %v282_v36 = vsel %vm2235_vm7, %v270_v30, 0.0  ;;  %v425_v61 = vsel %vm3346_vm5, %v384_v32, %v396_v26  ;;  %vm3351_vm15 = vmmov %vm3346_vm5 }
  0xd1   :  { %v429_v6 = vsel %vm3345_vm0, %v281_v1, %v408_v25  ;;  %v430_v38 = vsel %vm3346_vm5, %v282_v36, %v409_v12  ;;  %vm3350_vm0 = vcmp.lt.s32.totalorder %v1954_v49, 16  ;;  %v426_v5 = vsel %vm3351_vm15, %v385_v39, %v397_v27  ;;  %v2371_v27 = vpop.permute.xlu2 %448 }
  0xd2   :  { %v117_v29 = vpop.permute.xlu0 %116  ;;  %498 = vmatpush.msra.mxu0 %v429_v6  ;;  %527 = vmatpush.msra.mxu1 %v430_v38  ;;  %vm3352_vm6 = vmmov %vm3350_vm0  ;;  %vm3359_vm5 = vcmp.lt.s32.totalorder %v1954_v49, 15 }
  0xd3   :  { %v128_v55 = vsel %vm3350_vm0, %v1944_v43, %v117_v29  ;;  %1705 = vmatmul.msk.f32.gmra.mxu2 %vm3269_vm11, %v434_v59  ;;  %1710 = vmatmul.msk.f32.gmra.mxu3 %vm3269_vm11, %v434_v59  ;;  %v127_v8 = vsel %vm3352_vm6, %v117_v29, %v1761_v48  ;;  %vm3353_vm0 = vcmp.lt.s32.totalorder %v1986_v3, 15  ;;  %v3354_v43 = vmov 0 }
  0xd4   :  { %v137_v14 = vsel %vm2273_vm3, %v128_v55, 0.0  ;;  %499 = vmatpush.msra.mxu0 %v425_v61  ;;  %528 = vmatpush.msra.mxu1 %v426_v5  ;;  %vm2296_vm10 = vmand %vm2273_vm3, %vm3353_vm0  ;;  %vm3357_vm6 = vcmp.lt.s32.totalorder %v1954_v49, 17  ;;  %v362_v9 = vrot.slane %v127_v8, 4  ;;  %vm3361_vm11 = vcmp.ge.s32.totalorder %v1986_v3, 1 }
  0xd5   :  { %v3355_v43 = vsel %vm2296_vm10, 4294967295, %v3354_v43  ;;  %v91_v48 = vsel %vm3357_vm6, %v81_v54, %v1796_v34  ;;  %vm3358_vm15 = vmmov %vm3357_vm6  ;;  %v361_v21 = vrot.slane %v137_v14, 4  ;;  %v3362_v34 = vmov 0 }
  0xd6   :  { %3356 = vst [vmem:[#allocation17_spill] sm:$0xff] %v3355_v43  ;;  %v92_v40 = vsel %vm3358_vm15, %v2189_v2, %v81_v54  ;;  %v153_v20 = vpop.permute.xlu1 %152  ;;  %vm3360_vm0 = vmmov %vm3359_vm5  ;;  %vm3365_vm15 = vcmp.lt.s32.totalorder %v2019_v15, 15 }
  0xd7   :  { %v163_v58 = vsel %vm3359_vm5, %v153_v20, %v1766_v60  ;;  %v164_v28 = vsel %vm3360_vm0, %v1952_v47, %v153_v20  ;;  %vm2321_vm6 = vmand %vm2273_vm3, %vm3361_vm11  ;;  %v435_v60 = vld [vmem:[%s3248_s1 + $0x10] sm:$0xff]  ;;  %vm3366_vm5 = vcmask 1043456   ;;  %vm3368_vm11 = vcmp.ge.s32.totalorder %v2019_v15, 1 }
  0xd8   :  { %v3363_v34 = vsel %vm2321_vm6, 4294967295, %v3362_v34  ;;  %v173_v2 = vsel %vm2296_vm10, %v164_v28, 0.0  ;;  %v174_v45 = vsel %vm3365_vm15, %v163_v58, 0.0  ;;  %vm3367_vm0 = vmmov %vm3366_vm5  ;;  %v101_v23 = vsel %vm2321_vm6, %v92_v40, 0.0 }
  0xd9   :  { %3364 = vst [vmem:[#allocation18_spill] sm:$0xff] %v3363_v34  ;;  %v421_v47 = vsel %vm3366_vm5, %v173_v2, %v373_v63  ;;  %v422_v0 = vsel %vm3367_vm0, %v174_v45, %v374_v33  ;;  %v102_v52 = vsel %vm3368_vm11, %v91_v48, 0.0  ;;  %vm3371_vm15 = vmmov %vm3367_vm0 }
  0xda   :  { %500 = vmatpush.msra.mxu0 %v421_v47  ;;  %529 = vmatpush.msra.mxu1 %v422_v0  ;;  %v417_v24 = vsel %vm3371_vm15, %v101_v23, %v361_v21  ;;  %vm3372_vm4 = vmmov %vm3367_vm0 }
  0xdb   :  { %1706 = vmatmul.msk.f32.gmra.mxu2 %vm3369_vm12, %v435_v60  ;;  %1711 = vmatmul.msk.f32.gmra.mxu3 %vm3370_vm8, %v435_v60  ;;  %v418_v19 = vsel %vm3372_vm4, %v102_v52, %v362_v9  ;;  %vm3373_vm5 = vmmov %vm3370_vm8 }
  0xdc   :  { %501 = vmatpush.msra.mxu0 %v417_v24  ;;  %530 = vmatpush.msra.mxu1 %v418_v19  ;;  %vm3374_vm0 = vmmov %vm3373_vm5 }
  0xdd   :  { %1694 = vmatmul.msk.f32.vlgmr.msra.gmra.mxu0 %vm3373_vm5, %v2200_v18  ;;  %1699 = vmatmul.msk.f32.vlgmr.msra.gmra.mxu1 %vm3374_vm0, %v2200_v18  ;;  %vm3375_vm11 = vmmov %vm3374_vm0 }
  0xde   :  { %vm3376_vm12 = vmmov %vm3374_vm0  ;;  %v2357_v18 = vpop.permute.xlu1 %453 }
  0xdf   :  { %vm3377_vm8 = vmmov %vm3374_vm0 }
  0xe0   :  { %vm3378_vm15 = vmmov %vm3374_vm0 }
  0xe1   :  { %vm3379_vm4 = vmmov %vm3374_vm0 }
  0xe2   :  { %vm3380_vm14 = vmmov %vm3374_vm0 }
  0xe3   :  { %1707 = vmatmul.msk.f32.gmra.mxu2 %vm3375_vm11, %v436_v44  ;;  %1712 = vmatmul.msk.f32.gmra.mxu3 %vm3376_vm12, %v436_v44  ;;  %vm3381_vm5 = vmmov %vm3374_vm0 }
  0xe4   :  { %vm3382_vm7 = vmmov %vm3374_vm0 }
  0xe5   :  { %1695 = vmatmul.msk.f32.gmra.mxu0 %vm3377_vm8, %v434_v59  ;;  %1700 = vmatmul.msk.f32.gmra.mxu1 %vm3378_vm15, %v434_v59 }
  0xed   :  { %1696 = vmatmul.msk.f32.gmra.mxu0 %vm3379_vm4, %v435_v60  ;;  %1701 = vmatmul.msk.f32.gmra.mxu1 %vm3380_vm14, %v435_v60 }
  0xf5   :  { %1697 = vmatmul.msk.f32.gmra.mxu0 %vm3381_vm5, %v436_v44  ;;  %1702 = vmatmul.msk.f32.gmra.mxu1 %vm3382_vm7, %v436_v44 }
 0x116   :  { %v2359_v7 = vpop.permute.xlu1 %443 }
 0x14d   :  { %v2361_v10 = vpop.f32.mrf.mxu2 }
 0x14e   :  { %v590_v46 = vpop.f32.mrf.mxu3 }
 0x14f   :  { %v2364_v25 = vadd.f32 %v590_v46, %v2359_v7 }
 0x151   :  { %v2367_v12 = vmul.f32 0.70710677, %v2364_v25 }
 0x153   :  { %v754_v26 = vmul.f32 %v2367_v12, %v2367_v12 }
 0x155   :  { %v2373_v30 = vmin.f32 %v754_v26, 16.0 }
 0x156   :  { %v564_v31 = vpop.f32.mrf.mxu2  ;;  %v593_v32 = vpop.f32.mrf.mxu3 }
 0x157   :  { %v756_v53 = vmul.f32 2.1237322e-06, %v2373_v30  ;;  %v2377_v1 = vadd.f32 %v564_v31, %v2371_v27  ;;  %v2380_v36 = vadd.f32 %v593_v32, %v2371_v27 }
 0x159   :  { %v757_v59 = vadd.f32 0.00028619796, %v756_v53  ;;  %v2383_v39 = vmul.f32 0.70710677, %v2377_v1  ;;  %v2386_v6 = vmul.f32 0.70710677, %v2380_v36 }
 0x15a   :  { %v503_v38 = vpop.f32.mrf.mxu0  ;;  %v532_v50 = vpop.f32.mrf.mxu1 }
 0x15b   :  { %v874_v29 = vmul.f32 %v2383_v39, %v2383_v39  ;;  %v2391_v41 = vadd.f32 %v503_v38, %v2359_v7  ;;  %v2394_v54 = vadd.f32 %v532_v50, %v2359_v7  ;;  %v914_v55 = vmul.f32 %v2386_v6, %v2386_v6 }
 0x15c   :  { %v758_v61 = vmul.f32 %v757_v59, %v2373_v30 }
 0x15d   :  { %3383 = vst [vmem:[#allocation19_spill] sm:$0xff] %v2391_v41  ;;  %v2399_v5 = vmin.f32 %v874_v29, 16.0  ;;  %v2402_v8 = vmul.f32 0.70710677, %v2391_v41  ;;  %v2404_v14 = vmin.f32 %v914_v55, 16.0 }
 0x15e   :  { %3384 = vst [vmem:[#allocation20_spill] sm:$0xff] %v2394_v54  ;;  %v2407_v42 = vmul.f32 0.70710677, %v2394_v54  ;;  %v567_v63 = vpop.f32.mrf.mxu2  ;;  %v596_v33 = vpop.f32.mrf.mxu3  ;;  %v759_v28 = vadd.f32 0.0036580483, %v758_v61 }
 0x15f   :  { %3385 = vst [vmem:[#allocation21_spill] sm:$0xff] %v2402_v8  ;;  %v876_v48 = vmul.f32 2.1237322e-06, %v2399_v5  ;;  %v634_v40 = vmul.f32 %v2402_v8, %v2402_v8  ;;  %v2413_v20 = vadd.f32 %v567_v63, %v2357_v18  ;;  %v916_v21 = vmul.f32 2.1237322e-06, %v2404_v14 }
 0x160   :  { %3386 = vst [vmem:[#allocation22_spill] sm:$0xff] %v2407_v42  ;;  %v674_v9 = vmul.f32 %v2407_v42, %v2407_v42  ;;  %v2419_v58 = vadd.f32 %v596_v33, %v2357_v18  ;;  %v760_v46 = vmul.f32 %v759_v28, %v2373_v30 }
 0x161   :  { %v877_v2 = vadd.f32 0.00028619796, %v876_v48  ;;  %v917_v45 = vadd.f32 0.00028619796, %v916_v21  ;;  %v2421_v60 = vmin.f32 %v634_v40, 16.0 }
 0x162   :  { %v2424_v47 = vmul.f32 0.70710677, %v2413_v20  ;;  %v2427_v23 = vmin.f32 %v674_v9, 16.0  ;;  %v2430_v52 = vmul.f32 0.70710677, %v2419_v58  ;;  %v506_v24 = vpop.f32.mrf.mxu0 }
 0x163   :  { %v878_v0 = vmul.f32 %v877_v2, %v2399_v5  ;;  %v918_v19 = vmul.f32 %v917_v45, %v2404_v14  ;;  %v636_v32 = vmul.f32 2.1237322e-06, %v2421_v60  ;;  %v2442_v59 = vadd.f32 %v506_v24, %v2371_v27  ;;  %v535_v2 = vpop.f32.mrf.mxu1 }
 0x164   :  { %3387 = vst [vmem:[#allocation23_spill] sm:$0xff] %v2427_v23  ;;  %v1034_v44 = vmul.f32 %v2424_v47, %v2424_v47  ;;  %v1074_v31 = vmul.f32 %v2430_v52, %v2430_v52  ;;  %v676_v50 = vmul.f32 2.1237322e-06, %v2427_v23  ;;  %v761_v61 = vadd.f32 0.05243302, %v760_v46 }
 0x165   :  { %v879_v26 = vadd.f32 0.0036580483, %v878_v0  ;;  %3388 = vst [vmem:[#allocation24_spill] sm:$0xff] %v2442_v59  ;;  %v919_v38 = vadd.f32 0.0036580483, %v918_v19 }
 0x166   :  { %v2439_v53 = vmin.f32 %v1034_v44, 16.0  ;;  %v2445_v29 = vmin.f32 %v1074_v31, 16.0  ;;  %v637_v33 = vadd.f32 0.00028619796, %v636_v32  ;;  %v2450_v40 = vmul.f32 0.70710677, %v2442_v59  ;;  %v2460_v32 = vpop.permute.xlu0 %458 }
 0x167   :  { %v880_v63 = vmul.f32 %v879_v26, %v2399_v5  ;;  %v920_v21 = vmul.f32 %v919_v38, %v2404_v14  ;;  %v677_v9 = vadd.f32 0.00028619796, %v676_v50  ;;  %v762_v0 = vmul.f32 %v761_v61, %v2373_v30  ;;  %v570_v38 = vpop.f32.mrf.mxu2 }
 0x168   :  { %v1036_v55 = vmul.f32 2.1237322e-06, %v2439_v53  ;;  %3389 = vst [vmem:[#allocation25_spill] sm:$0xff] %v2450_v40  ;;  %v1076_v28 = vmul.f32 2.1237322e-06, %v2445_v29  ;;  %v638_v44 = vmul.f32 %v637_v33, %v2421_v60  ;;  %v794_v46 = vmul.f32 %v2450_v40, %v2450_v40 }
 0x169   :  { %v881_v24 = vadd.f32 0.05243302, %v880_v63  ;;  %v921_v26 = vadd.f32 0.05243302, %v920_v21  ;;  %v678_v31 = vmul.f32 %v677_v9, %v2427_v23  ;;  %v2470_v21 = vadd.f32 %v570_v38, %v2460_v32  ;;  %v599_v9 = vpop.f32.mrf.mxu3 }
 0x16a   :  { %v1037_v48 = vadd.f32 0.00028619796, %v1036_v55  ;;  %v1077_v19 = vadd.f32 0.00028619796, %v1076_v28  ;;  %v2463_v55 = vadd.f32 %v535_v2, %v2371_v27  ;;  %v509_v28 = vpop.f32.mrf.mxu0  ;;  %v639_v33 = vadd.f32 0.0036580483, %v638_v44 }
 0x16b   :  { %v882_v61 = vmul.f32 %v881_v24, %v2399_v5  ;;  %v2467_v17 = vmin.f32 %v794_v46, 16.0  ;;  %v922_v13 = vmul.f32 %v921_v26, %v2404_v14  ;;  %v679_v4 = vadd.f32 0.0036580483, %v678_v31  ;;  %v538_v26 = vpop.f32.mrf.mxu1 }
 0x16c   :  { %v1038_v45 = vmul.f32 %v1037_v48, %v2439_v53  ;;  %3390 = vst [vmem:[#allocation26_spill] sm:$0xff] %v2463_v55  ;;  %v763_v48 = vadd.f32 0.18741608, %v762_v0  ;;  %v1078_v63 = vmul.f32 %v1077_v19, %v2445_v29  ;;  %v2477_v27 = vmul.f32 0.5, %v2377_v1 }
 0x16d   :  { %v2481_v0 = vmul.f32 0.70710677, %v2463_v55  ;;  %v883_v19 = vadd.f32 0.18741608, %v882_v61  ;;  %v2485_v46 = vadd.f32 %v599_v9, %v2460_v32  ;;  %v2488_v31 = vmul.f32 0.5, %v2380_v36 }
 0x16e   :  { %v1039_v50 = vadd.f32 0.0036580483, %v1038_v45  ;;  %v2474_v45 = vmul.f32 0.5, %v2364_v25  ;;  %v764_v24 = vmul.f32 %v763_v48, %v2373_v30  ;;  %v1079_v44 = vadd.f32 0.0036580483, %v1078_v63 }
 0x16f   :  { %3392 = vst [vmem:[#allocation28_spill] sm:$0xff] %v2481_v0  ;;  %v640_v25 = vmul.f32 %v639_v33, %v2421_v60  ;;  %v796_v1 = vmul.f32 2.1237322e-06, %v2467_v17  ;;  %v2493_v38 = vmul.f32 0.70710677, %v2470_v21  ;;  %v680_v37 = vmul.f32 %v679_v4, %v2427_v23 }
 0x170   :  { %3391 = vst [vmem:[#allocation27_spill] sm:$0xff] %v2474_v45  ;;  %v1040_v2 = vmul.f32 %v1039_v50, %v2439_v53  ;;  %v923_v50 = vadd.f32 0.18741608, %v922_v13  ;;  %v2497_v48 = vmul.f32 0.5, %v2413_v20  ;;  %v2500_v61 = vadd.f32 %v509_v28, %v2357_v18 }
 0x171   :  { %v834_v36 = vmul.f32 %v2481_v0, %v2481_v0  ;;  %v1194_v33 = vmul.f32 %v2493_v38, %v2493_v38  ;;  %v2507_v9 = vadd.f32 %v538_v26, %v2357_v18  ;;  %v765_v62 = vadd.f32 1.1283791, %v764_v24 }
 0x172   :  { %v1041_v63 = vadd.f32 0.05243302, %v1040_v2  ;;  %v884_v13 = vmul.f32 %v883_v19, %v2399_v5  ;;  %v1080_v4 = vmul.f32 %v1079_v44, %v2445_v29  ;;  %v2512_v20 = vmul.f32 0.70710677, %v2485_v46  ;;  %v512_v44 = vpop.f32.mrf.mxu0 }
 0x173   :  { %3393 = vst [vmem:[#allocation29_spill] sm:$0xff] %v2507_v9  ;;  %v2514_v28 = vadd.f32 0.05243302, %v640_v25  ;;  %v2517_v2 = vmul.f32 0.5, %v2419_v58  ;;  %v797_v22 = vadd.f32 0.00028619796, %v796_v1  ;;  %v924_v3 = vmul.f32 %v923_v50, %v2404_v14 }
 0x174   :  { %v2519_v11 = vmin.f32 %v1194_v33, 16.0  ;;  %v2522_v18 = vadd.f32 0.05243302, %v680_v37  ;;  %v1234_v24 = vmul.f32 %v2512_v20, %v2512_v20  ;;  %v2527_v19 = vmul.f32 0.70710677, %v2500_v61 }
 0x175   :  { %3394 = vst [vmem:[#allocation30_spill] sm:$0xff] %v2514_v28  ;;  %v1042_v26 = vmul.f32 %v1041_v63, %v2439_v53  ;;  %v2530_v25 = vmin.f32 %v834_v36, 16.0  ;;  %v2534_v1 = vmul.f32 0.70710677, %v2507_v9  ;;  %v885_v33 = vadd.f32 1.1283791, %v884_v13 }
 0x176   :  { %3395 = vst [vmem:[#allocation31_spill] sm:$0xff] %v2522_v18  ;;  %v1196_v58 = vmul.f32 2.1237322e-06, %v2519_v11  ;;  %v1081_v50 = vadd.f32 0.05243302, %v1080_v4  ;;  %v2536_v37 = vmin.f32 %v1234_v24, 16.0  ;;  %v954_v56 = vmul.f32 %v2527_v19, %v2527_v19  ;;  %v541_v24 = vpop.f32.mrf.mxu1 }
 0x177   :  { %3396 = vst [vmem:[#allocation32_spill] sm:$0xff] %v2534_v1  ;;  %v798_v43 = vmul.f32 %v797_v22, %v2467_v17  ;;  %v994_v63 = vmul.f32 %v2534_v1, %v2534_v1  ;;  %v2544_v36 = vadd.f32 %v512_v44, %v2460_v32  ;;  %v2547_v15 = vmul.f32 %v765_v62, %v2367_v12 }
 0x178   :  { %v1197_v34 = vadd.f32 0.00028619796, %v1196_v58  ;;  %v925_v57 = vadd.f32 1.1283791, %v924_v3  ;;  %v1236_v13 = vmul.f32 2.1237322e-06, %v2536_v37  ;;  %v1082_v16 = vmul.f32 %v1081_v50, %v2445_v29 }
 0x179   :  { %3397 = vst [vmem:[#allocation33_spill] sm:$0xff] %v2547_v15  ;;  %v2550_v4 = vmin.f32 %v954_v56, 16.0  ;;  %v1043_v51 = vadd.f32 0.18741608, %v1042_v26  ;;  %v836_v35 = vmul.f32 2.1237322e-06, %v2530_v25  ;;  %v2563_v26 = vadd.f32 %v541_v24, %v2460_v32 }
 0x17a   :  { %v1198_v22 = vmul.f32 %v1197_v34, %v2519_v11  ;;  %v2554_v58 = vmin.f32 %v994_v63, 16.0  ;;  %v1237_v44 = vadd.f32 0.00028619796, %v1236_v13  ;;  %v2559_v62 = vmul.f32 0.70710677, %v2544_v36 }
 0x17b   :  { %v956_v49 = vmul.f32 2.1237322e-06, %v2550_v4  ;;  %v799_v3 = vadd.f32 0.0036580483, %v798_v43  ;;  %v2566_v54 = vmul.f32 %v885_v33, %v2383_v39  ;;  %v1044_v13 = vmul.f32 %v1043_v51, %v2439_v53 }
 0x17c   :  { %v1199_v12 = vadd.f32 0.0036580483, %v1198_v22  ;;  %v996_v56 = vmul.f32 2.1237322e-06, %v2554_v58  ;;  %v1238_v34 = vmul.f32 %v1237_v44, %v2536_v37  ;;  %v1114_v50 = vmul.f32 %v2559_v62, %v2559_v62 }
 0x17d   :  { %v957_v63 = vadd.f32 0.00028619796, %v956_v49  ;;  %v837_v41 = vadd.f32 0.00028619796, %v836_v35  ;;  %v1083_v42 = vadd.f32 0.18741608, %v1082_v16  ;;  %v800_v39 = vmul.f32 %v799_v3, %v2467_v17 }
 0x17e   :  { %v1200_v43 = vmul.f32 %v1199_v12, %v2519_v11  ;;  %v997_v22 = vadd.f32 0.00028619796, %v996_v56  ;;  %v1239_v8 = vadd.f32 0.0036580483, %v1238_v34  ;;  %v2574_v24 = vmin.f32 %v1114_v50, 16.0 }
 0x17f   :  { %v958_v32 = vmul.f32 %v957_v63, %v2550_v4  ;;  %v2579_v44 = vmul.f32 0.70710677, %v2563_v26  ;;  %v1207_v16 = vmul.f32 3.8918573e-05, %v2519_v11  ;;  %v2585_v56 = vmul.f32 %v925_v57, %v2386_v6 }
 0x180   :  { %v1201_v33 = vadd.f32 0.05243302, %v1200_v43  ;;  %v998_v49 = vmul.f32 %v997_v22, %v2554_v58  ;;  %v1240_v51 = vmul.f32 %v1239_v8, %v2536_v37  ;;  %v1116_v12 = vmul.f32 2.1237322e-06, %v2574_v24 }
 0x181   :  { %v959_v35 = vadd.f32 0.0036580483, %v958_v32  ;;  %v838_v34 = vmul.f32 %v837_v41, %v2530_v25  ;;  %v1154_v3 = vmul.f32 %v2579_v44, %v2579_v44  ;;  %v1208_v55 = vadd.f32 0.001143296, %v1207_v16 }
 0x182   :  { %v999_v63 = vadd.f32 0.0036580483, %v998_v49  ;;  %v1202_v50 = vmul.f32 %v1201_v33, %v2519_v11  ;;  %v1241_v43 = vadd.f32 0.05243302, %v1240_v51  ;;  %v1117_v22 = vadd.f32 0.00028619796, %v1116_v12 }
 0x183   :  { %v1045_v8 = vadd.f32 1.1283791, %v1044_v13  ;;  %v1084_v32 = vmul.f32 %v1083_v42, %v2445_v29  ;;  %v2593_v0 = vmul.f32 0.5, %v2470_v21  ;;  %v2595_v18 = vmin.f32 %v1154_v3, 16.0 }
 0x184   :  { %v801_v57 = vadd.f32 0.05243302, %v800_v39  ;;  %v960_v6 = vmul.f32 %v959_v35, %v2550_v4  ;;  %v1118_v41 = vmul.f32 %v1117_v22, %v2574_v24  ;;  %v1209_v49 = vmul.f32 %v1208_v55, %v2519_v11 }
 0x185   :  { %v839_v59 = vadd.f32 0.0036580483, %v838_v34  ;;  %v2601_v33 = vmul.f32 0.5, %v2485_v46  ;;  %v1000_v13 = vmul.f32 %v999_v63, %v2554_v58  ;;  %v1156_v42 = vmul.f32 2.1237322e-06, %v2595_v18 }
 0x186   :  { %v1203_v51 = vadd.f32 0.18741608, %v1202_v50  ;;  %v1242_v21 = vmul.f32 %v1241_v43, %v2536_v37  ;;  %v1119_v12 = vadd.f32 0.0036580483, %v1118_v41  ;;  %v1210_v16 = vadd.f32 0.014752088, %v1209_v49 }
 0x187   :  { %v2607_v39 = vmul.f32 %v1045_v8, %v2424_v47  ;;  %v1085_v35 = vadd.f32 1.1283791, %v1084_v32  ;;  %v2610_v3 = vmul.f32 0.5, %v2500_v61  ;;  %v1157_v55 = vadd.f32 0.00028619796, %v1156_v42 }
 0x188   :  { %v802_v46 = vmul.f32 %v801_v57, %v2467_v17  ;;  %v961_v34 = vadd.f32 0.05243302, %v960_v6  ;;  %v1120_v63 = vmul.f32 %v1119_v12, %v2574_v24  ;;  %v1211_v22 = vmul.f32 %v1210_v16, %v2519_v11 }
 0x189   :  { %3398 = vst [vmem:[#allocation34_spill] sm:$0xff] %v2610_v3  ;;  %v840_v50 = vmul.f32 %v839_v59, %v2530_v25  ;;  %v1001_v43 = vadd.f32 0.05243302, %v1000_v13  ;;  %v1158_v41 = vmul.f32 %v1157_v55, %v2595_v18  ;;  %v1247_v47 = vmul.f32 3.8918573e-05, %v2536_v37 }
 0x18a   :  { %v1204_v8 = vmul.f32 %v1203_v51, %v2519_v11  ;;  %v1243_v32 = vadd.f32 0.18741608, %v1242_v21  ;;  %v1121_v61 = vadd.f32 0.05243302, %v1120_v63  ;;  %v1212_v49 = vadd.f32 0.112945676, %v1211_v22 }
 0x18b   :  { %v2620_v42 = vmul.f32 %v1085_v35, %v2430_v52  ;;  %v1159_v57 = vadd.f32 0.0036580483, %v1158_v41  ;;  %v1248_v6 = vadd.f32 0.001143296, %v1247_v47  ;;  %v1047_v12 = vmul.f32 3.8918573e-05, %v2439_v53 }
 0x18c   :  { %v803_v16 = vadd.f32 0.18741608, %v802_v46  ;;  %v962_v59 = vmul.f32 %v961_v34, %v2550_v4  ;;  %v2625_v13 = vmul.f32 0.5, %v2544_v36  ;;  %v1213_v55 = vmul.f32 %v1212_v49, %v2519_v11 }
 0x18d   :  { %v841_v9 = vadd.f32 0.05243302, %v840_v50  ;;  %v1160_v51 = vmul.f32 %v1159_v57, %v2595_v18  ;;  %v1249_v21 = vmul.f32 %v1248_v6, %v2536_v37  ;;  %v1048_v63 = vadd.f32 0.001143296, %v1047_v12 }
 0x18e   :  { %3399 = vst [vmem:[#allocation35_spill] sm:$0xff] %v2625_v13  ;;  %v1205_v52 = vadd.f32 1.1283791, %v1204_v8  ;;  %v1122_v35 = vmul.f32 %v1121_v61, %v2574_v24  ;;  %v1214_v22 = vadd.f32 0.4994258, %v1213_v55  ;;  %v1244_v46 = vmul.f32 %v1243_v32, %v2536_v37 }
 0x18f   :  { %v1087_v41 = vmul.f32 3.8918573e-05, %v2445_v29  ;;  %v1002_v34 = vmul.f32 %v1001_v43, %v2554_v58  ;;  %v1250_v36 = vadd.f32 0.014752088, %v1249_v21  ;;  %v1049_v47 = vmul.f32 %v1048_v63, %v2439_v53 }
 0x190   :  { %v963_v49 = vadd.f32 0.18741608, %v962_v59  ;;  %v1215_v50 = vmul.f32 %v1214_v22, %v2519_v11  ;;  %v887_v6 = vmul.f32 3.8918573e-05, %v2399_v5  ;;  %v1161_v12 = vadd.f32 0.05243302, %v1160_v51 }
 0x191   :  { %v1088_v57 = vadd.f32 0.001143296, %v1087_v41  ;;  %v1251_v8 = vmul.f32 %v1250_v36, %v2536_v37  ;;  %v1050_v61 = vadd.f32 0.014752088, %v1049_v47  ;;  %v927_v55 = vmul.f32 3.8918573e-05, %v2404_v14 }
 0x192   :  { %v1123_v40 = vadd.f32 0.18741608, %v1122_v35  ;;  %v2639_v28 = vadd.f32 1.0, %v1215_v50  ;;  %v888_v32 = vadd.f32 0.001143296, %v887_v6  ;;  %v2644_v22 = vmul.f32 %v803_v16, %v2467_v17 }
 0x193   :  { %v1089_v43 = vmul.f32 %v1088_v57, %v2445_v29  ;;  %v1245_v21 = vadd.f32 1.1283791, %v1244_v46  ;;  %v1252_v63 = vadd.f32 0.112945676, %v1251_v8  ;;  %v1051_v59 = vmul.f32 %v1050_v61, %v2439_v53 }
 0x194   :  { %v928_v11 = vadd.f32 0.001143296, %v927_v55  ;;  %v2647_v51 = vmul.f32 %v841_v9, %v2530_v25  ;;  %v964_v41 = vmul.f32 %v963_v49, %v2550_v4  ;;  %1801 = vrcp.f32 %v2639_v28 }
 0x195   :  { %v2652_v35 = vmul.f32 %v1205_v52, %v2493_v38  ;;  %v1162_v36 = vmul.f32 %v1161_v12, %v2595_v18  ;;  %v1253_v46 = vmul.f32 %v1252_v63, %v2536_v37  ;;  %v1052_v47 = vadd.f32 0.112945676, %v1051_v59 }
 0x196   :  { %v1124_v50 = vmul.f32 %v1123_v40, %v2574_v24  ;;  %v1090_v57 = vadd.f32 0.014752088, %v1089_v43  ;;  %v889_v16 = vmul.f32 %v888_v32, %v2399_v5  ;;  %v929_v9 = vmul.f32 %v928_v11, %v2404_v14 }
 0x197   :  { %v2660_v6 = vmul.f32 %v1245_v21, %v2512_v20  ;;  %v2662_v49 = vadd.f32 0.18741608, %v1002_v34  ;;  %v1254_v8 = vadd.f32 0.4994258, %v1253_v46  ;;  %v1053_v38 = vmul.f32 %v1052_v47, %v2439_v53 }
 0x198   :  { %v2665_v52 = vadd.f32 1.1283791, %v964_v41  ;;  %v1091_v12 = vmul.f32 %v1090_v57, %v2445_v29  ;;  %v890_v61 = vadd.f32 0.014752088, %v889_v16  ;;  %v930_v55 = vadd.f32 0.014752088, %v929_v9 }
 0x199   :  { %v1163_v40 = vadd.f32 0.18741608, %v1162_v36  ;;  %v1255_v43 = vmul.f32 %v1254_v8, %v2536_v37  ;;  %v1054_v32 = vadd.f32 0.4994258, %v1053_v38  ;;  %v2671_v63 = vadd.f32 %v2361_v10, %v2359_v7 }
 0x19a   :  { %v1802_v20 = vpop.eup %1801  ;;  %v2673_v34 = vadd.f32 1.1283791, %v1124_v50  ;;  %v1092_v21 = vadd.f32 0.112945676, %v1091_v12  ;;  %v891_v59 = vmul.f32 %v890_v61, %v2399_v5  ;;  %v931_v11 = vmul.f32 %v930_v55, %v2404_v14 }
 0x19b   :  { %v1218_v41 = vmul.f32 %v1802_v20, %v2639_v28  ;;  %v1226_v46 = vand.u32 2147483647, %v2639_v28  ;;  %v2679_v36 = vadd.f32 1.0, %v1255_v43  ;;  %v1055_v37 = vmul.f32 %v1054_v32, %v2439_v53 }
 0x19c   :  { %vm1222_vm14 = vweird.f32 %v2639_v28  ;;  %v1093_v7 = vmul.f32 %v1092_v21, %v2445_v29  ;;  %v892_v10 = vadd.f32 0.112945676, %v891_v59  ;;  %v932_v47 = vadd.f32 0.112945676, %v931_v11 }
 0x19d   :  { %v2685_v50 = vmul.f32 %v1163_v40, %v2595_v18  ;;  %v1219_v57 = vsub.f32 1.0, %v1218_v41  ;;  %1803 = vrcp.f32 %v2679_v36  ;;  %v2689_v16 = vmul.f32 0.70710677, %v2671_v63 }
 0x19e   :  { %v1228_v9 = vand.u32 2147483648, %v2639_v28  ;;  %v2692_v8 = vadd.f32 1.0, %v1055_v37  ;;  %v1094_v53 = vadd.f32 0.4994258, %v1093_v7  ;;  %v893_v38 = vmul.f32 %v892_v10, %v2399_v5 }
 0x19f   :  { %v1220_v12 = vmul.f32 %v1802_v20, %v1219_v57  ;;  %vm1223_vm7 = vweird.f32 %v1802_v20  ;;  %vm2695_vm0 = vcmp.eq.f32.partialorder %v1226_v46, 8.507059e+37  ;;  %v933_v55 = vmul.f32 %v932_v47, %v2404_v14 }
 0x1a0   :  { %v1266_v40 = vand.u32 2147483647, %v2679_v36  ;;  %v1268_v43 = vand.u32 2147483648, %v2679_v36  ;;  %1805 = vrcp.f32 %v2692_v8  ;;  %v767_v32 = vmul.f32 3.8918573e-05, %v2373_v30  ;;  %vm1224_vm11 = vmor %vm1222_vm14, %vm1223_vm7 }
 0x1a1   :  { %v1221_v21 = vadd.f32 %v1802_v20, %v1220_v12  ;;  %v1095_v59 = vmul.f32 %v1094_v53, %v2445_v29  ;;  %v894_v11 = vadd.f32 0.4994258, %v893_v38  ;;  %v714_v41 = vmul.f32 %v2689_v16, %v2689_v16 }
 0x1a2   :  { %v1229_v46 = vor.u32 1.1754944e-38, %v1228_v9  ;;  %vm1262_vm12 = vweird.f32 %v2679_v36  ;;  %v1066_v37 = vand.u32 2147483647, %v2692_v8  ;;  %v934_v7 = vadd.f32 0.4994258, %v933_v55 }
 0x1a3   :  { %v1804_v10 = vpop.eup %1803  ;;  %v1225_v47 = vsel %vm1224_vm11, %v1802_v20, %v1221_v21  ;;  %v1068_v57 = vand.u32 2147483648, %v2692_v8  ;;  %v2712_v12 = vadd.f32 1.0, %v1095_v59  ;;  %v895_v29 = vmul.f32 %v894_v11, %v2399_v5 }
 0x1a4   :  { %v1230_v53 = vsel %vm2695_vm0, %v1229_v46, %v1225_v47  ;;  %v1258_v28 = vmul.f32 %v1804_v10, %v2679_v36  ;;  %vm2718_vm8 = vcmp.eq.f32.partialorder %v1266_v40, 8.507059e+37  ;;  %v1269_v38 = vor.u32 1.1754944e-38, %v1268_v43 }
 0x1a5   :  { %v935_v55 = vmul.f32 %v934_v7, %v2404_v14  ;;  %v1231_v20 = vmul.f32 %v1230_v53, %v2652_v35  ;;  %1807 = vrcp.f32 %v2712_v12  ;;  %v2726_v21 = vmin.f32 %v714_v41, 16.0 }
 0x1a6   :  { %v768_v5 = vadd.f32 0.001143296, %v767_v32  ;;  %v1806_v61 = vpop.eup %1805  ;;  %v1259_v59 = vsub.f32 1.0, %v1258_v28  ;;  %v1108_v11 = vand.u32 2147483648, %v2712_v12  ;;  %v2729_v40 = vadd.f32 1.0, %v895_v29 }
 0x1a7   :  { %v2731_v46 = vadd.f32 1.0, %v935_v55  ;;  %v1727_v43 = vclamps-f32 %v1231_v20, 1.0  ;;  %vm1263_vm4 = vweird.f32 %v1804_v10  ;;  %v1058_v14 = vmul.f32 %v1806_v61, %v2692_v8 }
 0x1a8   :  { %vm2734_vm5 = vcmp.eq.f32.partialorder %v1066_v37, 8.507059e+37  ;;  %v1069_v7 = vor.u32 1.1754944e-38, %v1068_v57  ;;  %v1260_v41 = vmul.f32 %v1804_v10, %v1259_v59  ;;  %vm1063_vm14 = vweird.f32 %v1806_v61  ;;  %vm1264_vm11 = vmor %vm1262_vm12, %vm1263_vm4 }
 0x1a9   :  { %v1106_v32 = vand.u32 2147483647, %v2712_v12  ;;  %1809 = vrcp.f32 %v2729_v40  ;;  %v1288_v47 = vadd.f32 1.0, %v1727_v43  ;;  %v1059_v29 = vsub.f32 1.0, %v1058_v14 }
 0x1aa   :  { %v1109_v53 = vor.u32 1.1754944e-38, %v1108_v11  ;;  %v908_v28 = vand.u32 2147483648, %v2729_v40  ;;  %v1261_v55 = vadd.f32 %v1804_v10, %v1260_v41  ;;  %v906_v37 = vand.u32 2147483647, %v2729_v40 }
 0x1ab   :  { %1811 = vrcp.f32 %v2731_v46  ;;  %v1808_v57 = vpop.eup %1807  ;;  %v1304_v20 = vmul.f32 %v1288_v47, %v2593_v0  ;;  %v1060_v59 = vmul.f32 %v1806_v61, %v1059_v29  ;;  %v946_v11 = vand.u32 2147483647, %v2731_v46 }
 0x1ac   :  { %v1265_v43 = vsel %vm1264_vm11, %v1804_v10, %v1261_v55  ;;  %v1098_v14 = vmul.f32 %v1808_v57, %v2712_v12  ;;  %vm1103_vm0 = vweird.f32 %v1808_v57  ;;  %vm2752_vm7 = vcmp.eq.f32.partialorder %v1106_v32, 8.507059e+37 }
 0x1ad   :  { %v909_v3 = vor.u32 1.1754944e-38, %v908_v28  ;;  %1403 = vmatpush.msrb.mxu2 %v1304_v20  ;;  %v1270_v0 = vsel %vm2718_vm8, %v1269_v38, %v1265_v43  ;;  %v1061_v36 = vadd.f32 %v1806_v61, %v1060_v59  ;;  %v948_v47 = vand.u32 2147483648, %v2731_v46 }
 0x1ae   :  { %v716_v29 = vmul.f32 2.1237322e-06, %v2726_v21  ;;  %v1271_v10 = vmul.f32 %v1270_v0, %v2660_v6  ;;  %vm3408_vm12 = vweird.f32 %v2692_v8  ;;  %v1099_v32 = vsub.f32 1.0, %v1098_v14 }
 0x1af   :  { %v1810_v1 = vpop.eup %1809  ;;  %vm1064_vm4 = vmor %vm3408_vm12, %vm1063_vm14  ;;  %v727_v55 = vmul.f32 3.8918573e-05, %v2726_v21  ;;  %v769_v28 = vmul.f32 %v768_v5, %v2373_v30  ;;  %vm2767_vm11 = vcmp.eq.f32.partialorder %v906_v37, 8.507059e+37  ;;  %vm2771_vm15 = vcmp.eq.f32.partialorder %v946_v11, 8.507059e+37 }
 0x1b0   :  { %v1065_v20 = vsel %vm1064_vm4, %v1806_v61, %v1061_v36  ;;  %v898_v9 = vmul.f32 %v1810_v1, %v2729_v40  ;;  %vm903_vm8 = vweird.f32 %v1810_v1  ;;  %v949_v6 = vor.u32 1.1754944e-38, %v948_v47 }
 0x1b1   :  { %v1812_v8 = vpop.eup %1811  ;;  %v1728_v43 = vclamps-f32 %v1271_v10, 1.0  ;;  %v1070_v14 = vsel %vm2734_vm5, %v1069_v7, %v1065_v20  ;;  %v1100_v0 = vmul.f32 %v1808_v57, %v1099_v32  ;;  %v717_v5 = vadd.f32 0.00028619796, %v716_v29 }
 0x1b2   :  { %v1071_v61 = vmul.f32 %v1070_v14, %v2607_v39  ;;  %v899_v36 = vsub.f32 1.0, %v898_v9  ;;  %v938_v37 = vmul.f32 %v1812_v8, %v2731_v46  ;;  %v728_v23 = vadd.f32 0.001143296, %v727_v55 }
 0x1b3   :  { %v1289_v13 = vadd.f32 1.0, %v1728_v43  ;;  %v1101_v45 = vadd.f32 %v1808_v57, %v1100_v0  ;;  %v718_v11 = vmul.f32 %v717_v5, %v2726_v21  ;;  %vm3413_vm12 = vweird.f32 %v2712_v12 }
 0x1b4   :  { %v1723_v15 = vclamps-f32 %v1071_v61, 1.0  ;;  %vm1104_vm4 = vmor %vm3413_vm12, %vm1103_vm0  ;;  %v900_v35 = vmul.f32 %v1810_v1, %v899_v36  ;;  %v939_v7 = vsub.f32 1.0, %v938_v37  ;;  %v770_v47 = vadd.f32 0.014752088, %v769_v28 }
 0x1b5   :  { %v1305_v29 = vmul.f32 %v1289_v13, %v2601_v33  ;;  %v1105_v39 = vsel %vm1104_vm4, %v1808_v57, %v1101_v45  ;;  %v719_v10 = vadd.f32 0.0036580483, %v718_v11  ;;  %v729_v32 = vmul.f32 %v728_v23, %v2726_v21 }
 0x1b6   :  { %v1284_v20 = vadd.f32 1.0, %v1723_v15  ;;  %v1110_v9 = vsel %vm2752_vm7, %v1109_v53, %v1105_v39  ;;  %v901_v43 = vadd.f32 %v1810_v1, %v900_v35  ;;  %vm3414_vm5 = vweird.f32 %v2729_v40 }
 0x1b7   :  { %vm904_vm14 = vmor %vm3414_vm5, %vm903_vm8  ;;  %v940_v12 = vmul.f32 %v1812_v8, %v939_v7  ;;  %1435 = vmatpush.msrb.mxu3 %v1305_v29  ;;  %v1111_v55 = vmul.f32 %v1110_v9, %v2620_v42  ;;  %vm3415_vm0 = vweird.f32 %v1812_v8  ;;  %vm3416_vm12 = vweird.f32 %v2731_v46 }
 0x1b8   :  { %vm2794_vm4 = vmor %vm3416_vm12, %vm3415_vm0  ;;  %v720_v15 = vmul.f32 %v719_v10, %v2726_v21  ;;  %v730_v23 = vadd.f32 0.014752088, %v729_v32  ;;  %v771_v33 = vmul.f32 %v770_v47, %v2373_v30  ;;  %v1300_v13 = vmul.f32 %v1284_v20, %v2497_v48 }
 0x1b9   :  { %v905_v40 = vsel %vm904_vm14, %v1810_v1, %v901_v43  ;;  %v941_v53 = vadd.f32 %v1812_v8, %v940_v12  ;;  %v1127_v57 = vmul.f32 3.8918573e-05, %v2574_v24  ;;  %v1724_v41 = vclamps-f32 %v1111_v55, 1.0 }
 0x1ba   :  { %v910_v42 = vsel %vm2767_vm11, %v909_v3, %v905_v40  ;;  %v721_v46 = vadd.f32 0.05243302, %v720_v15  ;;  %v731_v28 = vmul.f32 %v730_v23, %v2726_v21  ;;  %1404 = vmatpush.msrb.mxu2 %v1300_v13  ;;  %v772_v5 = vadd.f32 0.112945676, %v771_v33 }
 0x1bb   :  { %v911_v14 = vmul.f32 %v910_v42, %v2566_v54  ;;  %v945_v0 = vsel %vm2794_vm4, %v1812_v8, %v941_v53  ;;  %v1128_v61 = vadd.f32 0.001143296, %v1127_v57  ;;  %v1285_v48 = vadd.f32 1.0, %v1724_v41 }
 0x1bc   :  { %v950_v1 = vsel %vm2771_vm15, %v949_v6, %v945_v0  ;;  %v722_v36 = vmul.f32 %v721_v46, %v2726_v21  ;;  %v732_v37 = vadd.f32 0.112945676, %v731_v28  ;;  %v773_v11 = vmul.f32 %v772_v5, %v2373_v30 }
 0x1bd   :  { %v1719_v38 = vclamps-f32 %v911_v14, 1.0  ;;  %v951_v3 = vmul.f32 %v950_v1, %v2585_v56  ;;  %v1129_v35 = vmul.f32 %v1128_v61, %v2574_v24  ;;  %v1301_v54 = vmul.f32 %v1285_v48, %v2517_v2 }
 0x1be   :  { %v723_v7 = vadd.f32 0.18741608, %v722_v36  ;;  %v733_v8 = vmul.f32 %v732_v37, %v2726_v21  ;;  %v1167_v47 = vmul.f32 3.8918573e-05, %v2595_v18  ;;  %v774_v6 = vadd.f32 0.4994258, %v773_v11 }
 0x1bf   :  { %v1280_v29 = vadd.f32 1.0, %v1719_v38  ;;  %v1720_v59 = vclamps-f32 %v951_v3, 1.0  ;;  %v1130_v39 = vadd.f32 0.014752088, %v1129_v35  ;;  %1436 = vmatpush.msrb.mxu3 %v1301_v54  ;;  %v967_v20 = vmul.f32 3.8918573e-05, %v2550_v4 }
 0x1c0   :  { %v724_v10 = vmul.f32 %v723_v7, %v2726_v21  ;;  %v734_v32 = vadd.f32 0.4994258, %v733_v8  ;;  %v1168_v56 = vadd.f32 0.001143296, %v1167_v47  ;;  %v775_v2 = vmul.f32 %v774_v6, %v2373_v30 }
 0x1c1   :  { %v1296_v9 = vmul.f32 %v1280_v29, %v2477_v27  ;;  %v1281_v43 = vadd.f32 1.0, %v1720_v59  ;;  %v1131_v12 = vmul.f32 %v1130_v39, %v2574_v24  ;;  %v1165_v55 = vadd.f32 1.1283791, %v2685_v50 }
 0x1c2   :  { %v735_v45 = vmul.f32 %v734_v32, %v2726_v21  ;;  %v1169_v15 = vmul.f32 %v1168_v56, %v2595_v18  ;;  %v968_v23 = vadd.f32 0.001143296, %v967_v20  ;;  %v725_v13 = vadd.f32 1.1283791, %v724_v10 }
 0x1c3   :  { %1405 = vmatpush.msrb.mxu2 %v1296_v9  ;;  %v1297_v33 = vmul.f32 %v1281_v43, %v2488_v31  ;;  %v776_v40 = vadd.f32 1.0, %v775_v2  ;;  %v1132_v53 = vadd.f32 0.112945676, %v1131_v12  ;;  %v1007_v41 = vmul.f32 3.8918573e-05, %v2554_v58 }
 0x1c4   :  { %v2826_v57 = vadd.f32 1.0, %v735_v45  ;;  %v1170_v27 = vadd.f32 0.014752088, %v1169_v15  ;;  %v969_v30 = vmul.f32 %v968_v23, %v2550_v4  ;;  %v2831_v50 = vadd.f32 1.1283791, %v2644_v22 }
 0x1c5   :  { %v2834_v21 = vadd.f32 0.18741608, %v2647_v51  ;;  %v2837_v42 = vmul.f32 0.5, %v2563_v26  ;;  %1437 = vmatpush.msrb.mxu3 %v1297_v33  ;;  %1813 = vrcp.f32 %v776_v40  ;;  %v2841_v31 = vmul.f32 %v2665_v52, %v2527_v19 }
 0x1c6   :  { %v2845_v46 = vmul.f32 %v2662_v49, %v2554_v58  ;;  %v2849_v22 = vmul.f32 %v2673_v34, %v2559_v62  ;;  %1815 = vrcp.f32 %v2826_v57  ;;  %v2853_v51 = vmul.f32 %v1165_v55, %v2579_v44 }
 0x1c7   :  { %v2856_v26 = vmul.f32 0.5, %v2671_v63  ;;  %v1133_v28 = vmul.f32 %v1132_v53, %v2574_v24  ;;  %v1171_v19 = vmul.f32 %v1170_v27, %v2595_v18  ;;  %v2861_v52 = vmul.f32 %v725_v13, %v2689_v16 }
 0x1c8   :  { %v786_v49 = vand.u32 2147483647, %v776_v40  ;;  %v970_v14 = vadd.f32 0.014752088, %v969_v30  ;;  %v1008_v0 = vadd.f32 0.001143296, %v1007_v41  ;;  %vm782_vm15 = vweird.f32 %v776_v40 }
 0x1c9   :  { %v1134_v62 = vadd.f32 0.4994258, %v1133_v28  ;;  %v1172_v34 = vadd.f32 0.112945676, %v1171_v19  ;;  %v807_v5 = vmul.f32 3.8918573e-05, %v2467_v17  ;;  %vm742_vm7 = vweird.f32 %v2826_v57 }
 0x1ca   :  { %v788_v44 = vand.u32 2147483648, %v776_v40  ;;  %v971_v63 = vmul.f32 %v970_v14, %v2550_v4  ;;  %v1009_v61 = vmul.f32 %v1008_v0, %v2554_v58  ;;  %v746_v1 = vand.u32 2147483647, %v2826_v57  ;;  %v3423_v0 = vld [vmem:[#allocation33_spill] sm:$0xff] }
 0x1cb   :  { %v1814_v48 = vpop.eup %1813  ;;  %v1135_v16 = vmul.f32 %v1134_v62, %v2574_v24  ;;  %v1173_v36 = vmul.f32 %v1172_v34, %v2595_v18  ;;  %v808_v37 = vadd.f32 0.001143296, %v807_v5  ;;  %v748_v3 = vand.u32 2147483648, %v2826_v57 }
 0x1cc   :  { %v1816_v38 = vpop.eup %1815  ;;  %v778_v11 = vmul.f32 %v1814_v48, %v776_v40  ;;  %v972_v35 = vadd.f32 0.112945676, %v971_v63  ;;  %v1010_v54 = vadd.f32 0.014752088, %v1009_v61  ;;  %vm783_vm8 = vweird.f32 %v1814_v48  ;;  %v3424_v63 = vld [vmem:[#allocation23_spill] sm:$0xff] }
 0x1cd   :  { %v738_v7 = vmul.f32 %v1816_v38, %v2826_v57  ;;  %v2872_v8 = vadd.f32 1.0, %v1135_v16  ;;  %v1174_v47 = vadd.f32 0.4994258, %v1173_v36  ;;  %v809_v6 = vmul.f32 %v808_v37, %v2467_v17  ;;  %vm2885_vm5 = vmor %vm782_vm15, %vm783_vm8 }
 0x1ce   :  { %v779_v29 = vsub.f32 1.0, %v778_v11  ;;  %v973_v59 = vmul.f32 %v972_v35, %v2550_v4  ;;  %v1011_v24 = vmul.f32 %v1010_v54, %v2554_v58  ;;  %vm2877_vm11 = vcmp.eq.f32.partialorder %v786_v49, 8.507059e+37 }
 0x1cf   :  { %v739_v39 = vsub.f32 1.0, %v738_v7  ;;  %v789_v32 = vor.u32 1.1754944e-38, %v788_v44  ;;  %1817 = vrcp.f32 %v2872_v8  ;;  %v749_v56 = vor.u32 1.1754944e-38, %v748_v3 }
 0x1d0   :  { %v780_v20 = vmul.f32 %v1814_v48, %v779_v29  ;;  %v1175_v9 = vmul.f32 %v1174_v47, %v2595_v18  ;;  %v974_v43 = vadd.f32 0.4994258, %v973_v59  ;;  %vm743_vm14 = vweird.f32 %v1816_v38 }
 0x1d1   :  { %v740_v2 = vmul.f32 %v1816_v38, %v739_v39  ;;  %v1012_v55 = vadd.f32 0.112945676, %v1011_v24  ;;  %v810_v45 = vadd.f32 0.014752088, %v809_v6  ;;  %v847_v13 = vmul.f32 3.8918573e-05, %v2530_v25  ;;  %vm744_vm12 = vmor %vm742_vm7, %vm743_vm14 }
 0x1d2   :  { %v781_v15 = vadd.f32 %v1814_v48, %v780_v20  ;;  %v2889_v23 = vadd.f32 1.0, %v1175_v9  ;;  %v975_v33 = vmul.f32 %v974_v43, %v2550_v4  ;;  %vm747_vm0 = vcmp.eq.f32.partialorder %v746_v1, 8.507059e+37  ;;  %v3427_v24 = vld [vmem:[#allocation27_spill] sm:$0xff] }
 0x1d3   :  { %v741_v53 = vadd.f32 %v1816_v38, %v740_v2  ;;  %v1146_v18 = vand.u32 2147483647, %v2872_v8  ;;  %v2895_v27 = vmul.f32 3.8918573e-05, %v2421_v60  ;;  %v1148_v30 = vand.u32 2147483648, %v2872_v8 }
 0x1d4   :  { %v785_v40 = vsel %vm2885_vm5, %v1814_v48, %v781_v15  ;;  %1819 = vrcp.f32 %v2889_v23  ;;  %v1013_v4 = vmul.f32 %v1012_v55, %v2554_v58  ;;  %v2906_v49 = vadd.f32 1.0, %v975_v33 }
 0x1d5   :  { %v1818_v41 = vpop.eup %1817  ;;  %v745_v28 = vsel %vm744_vm12, %v1816_v38, %v741_v53  ;;  %v790_v19 = vsel %vm2877_vm11, %v789_v32, %v785_v40  ;;  %v811_v14 = vmul.f32 %v810_v45, %v2467_v17  ;;  %v848_v5 = vadd.f32 0.001143296, %v847_v13 }
 0x1d6   :  { %v750_v57 = vsel %vm747_vm0, %v749_v56, %v745_v28  ;;  %v791_v62 = vmul.f32 %v790_v19, %v3423_v0  ;;  %v1138_v34 = vmul.f32 %v1818_v41, %v2872_v8  ;;  %vm1142_vm4 = vweird.f32 %v2872_v8 }
 0x1d7   :  { %v751_v44 = vmul.f32 %v750_v57, %v2861_v52  ;;  %1821 = vrcp.f32 %v2906_v49  ;;  %v2915_v61 = vmul.f32 3.8918573e-05, %v3424_v63  ;;  %vm2917_vm15 = vcmp.eq.f32.partialorder %v1146_v18, 8.507059e+37 }
 0x1d8   :  { %v1716_v48 = vclamps-f32 %v791_v62, 1.0  ;;  %v1139_v1 = vsub.f32 1.0, %v1138_v34  ;;  %v1149_v36 = vor.u32 1.1754944e-38, %v1148_v30  ;;  %v1188_v38 = vand.u32 2147483648, %v2889_v23 }
 0x1d9   :  { %v1715_v37 = vclamps-f32 %v751_v44, 1.0  ;;  %v1014_v3 = vadd.f32 0.4994258, %v1013_v4  ;;  %v812_v11 = vadd.f32 0.112945676, %v811_v14  ;;  %vm1143_vm7 = vweird.f32 %v1818_v41  ;;  %v3428_v44 = vld [vmem:[#allocation35_spill] sm:$0xff] }
 0x1da   :  { %v1820_v52 = vpop.eup %1819  ;;  %v1277_v35 = vadd.f32 1.0, %v1716_v48  ;;  %v1140_v54 = vmul.f32 %v1818_v41, %v1139_v1  ;;  %v849_v7 = vmul.f32 %v848_v5, %v2530_v25  ;;  %vm1182_vm8 = vweird.f32 %v2889_v23  ;;  %vm1144_vm11 = vmor %vm1142_vm4, %vm1143_vm7 }
 0x1db   :  { %v1276_v47 = vadd.f32 1.0, %v1715_v37  ;;  %v1178_v29 = vmul.f32 %v1820_v52, %v2889_v23  ;;  %v1186_v59 = vand.u32 2147483647, %v2889_v23  ;;  %v1015_v10 = vmul.f32 %v1014_v3, %v2554_v58 }
 0x1dc   :  { %v1293_v6 = vmul.f32 %v1277_v35, %v3427_v24  ;;  %v1141_v39 = vadd.f32 %v1818_v41, %v1140_v54  ;;  %v813_v32 = vmul.f32 %v812_v11, %v2467_v17  ;;  %v1189_v43 = vor.u32 1.1754944e-38, %v1188_v38 }
 0x1dd   :  { %v1822_v56 = vpop.eup %1821  ;;  %v1292_v20 = vmul.f32 %v1276_v47, %v2856_v26  ;;  %v1179_v9 = vsub.f32 1.0, %v1178_v29  ;;  %v850_v2 = vadd.f32 0.014752088, %v849_v7  ;;  %vm1183_vm14 = vweird.f32 %v1820_v52 }
 0x1de   :  { %1438 = vmatpush.msrb.mxu3 %v1293_v6  ;;  %v1145_v12 = vsel %vm1144_vm11, %v1818_v41, %v1141_v39  ;;  %v978_v55 = vmul.f32 %v1822_v56, %v2906_v49  ;;  %v2933_v45 = vadd.f32 1.0, %v1015_v10  ;;  %v814_v33 = vadd.f32 0.4994258, %v813_v32  ;;  %vm1184_vm5 = vmor %vm1182_vm8, %vm1183_vm14  ;;  %v3429_v32 = vld [vmem:[#allocation32_spill] sm:$0xff] }
 0x1df   :  { %1406 = vmatpush.msrb.mxu2 %v1292_v20  ;;  %v1150_v58 = vsel %vm2917_vm15, %v1149_v36, %v1145_v12  ;;  %v1180_v15 = vmul.f32 %v1820_v52, %v1179_v9  ;;  %v851_v26 = vmul.f32 %v850_v2, %v2530_v25  ;;  %v986_v53 = vand.u32 2147483647, %v2906_v49  ;;  %v3430_v9 = vld [vmem:[#allocation34_spill] sm:$0xff] }
 0x1e0   :  { %v1151_v8 = vmul.f32 %v1150_v58, %v2849_v22  ;;  %v979_v13 = vsub.f32 1.0, %v978_v55  ;;  %1823 = vrcp.f32 %v2933_v45  ;;  %v988_v40 = vand.u32 2147483648, %v2906_v49 }
 0x1e1   :  { %v1181_v18 = vadd.f32 %v1820_v52, %v1180_v15  ;;  %v815_v30 = vmul.f32 %v814_v33, %v2467_v17  ;;  %v648_v4 = vadd.f32 0.001143296, %v2895_v27  ;;  %vm983_vm0 = vweird.f32 %v1822_v56 }
 0x1e2   :  { %v1725_v41 = vclamps-f32 %v1151_v8, 1.0  ;;  %v980_v28 = vmul.f32 %v1822_v56, %v979_v13  ;;  %v852_v22 = vadd.f32 0.112945676, %v851_v26  ;;  %vm1187_vm12 = vcmp.eq.f32.partialorder %v1186_v59, 8.507059e+37  ;;  %v3431_v13 = vld [vmem:[#allocation30_spill] sm:$0xff] }
 0x1e3   :  { %v1185_v19 = vsel %vm1184_vm5, %v1820_v52, %v1181_v18  ;;  %vm982_vm4 = vweird.f32 %v2906_v49  ;;  %v2948_v14 = vadd.f32 1.0, %v815_v30  ;;  %v989_v34 = vor.u32 1.1754944e-38, %v988_v40  ;;  %v3432_v18 = vld [vmem:[#allocation25_spill] sm:$0xff] }
 0x1e4   :  { %v1286_v57 = vadd.f32 1.0, %v1725_v41  ;;  %v1190_v0 = vsel %vm1187_vm12, %v1189_v43, %v1185_v19  ;;  %v981_v62 = vadd.f32 %v1822_v56, %v980_v28  ;;  %v853_v17 = vmul.f32 %v852_v22, %v2530_v25  ;;  %vm984_vm15 = vmor %vm982_vm4, %vm983_vm0  ;;  %v3433_v30 = vld [vmem:[#allocation29_spill] sm:$0xff] }
 0x1e5   :  { %v1191_v27 = vmul.f32 %v1190_v0, %v2853_v51  ;;  %1825 = vrcp.f32 %v2948_v14  ;;  %v649_v23 = vmul.f32 %v648_v4, %v2421_v60  ;;  %vm987_vm7 = vcmp.eq.f32.partialorder %v986_v53, 8.507059e+37 }
 0x1e6   :  { %v1824_v5 = vpop.eup %1823  ;;  %v1302_v48 = vmul.f32 %v1286_v57, %v3428_v44  ;;  %v985_v1 = vsel %vm984_vm15, %v1822_v56, %v981_v62  ;;  %v854_v49 = vadd.f32 0.4994258, %v853_v17  ;;  %v1005_v16 = vadd.f32 1.1283791, %v2845_v46 }
 0x1e7   :  { %v1726_v36 = vclamps-f32 %v1191_v27, 1.0  ;;  %v990_v37 = vsel %vm987_vm7, %v989_v34, %v985_v1  ;;  %v1018_v38 = vmul.f32 %v1824_v5, %v2933_v45  ;;  %v1026_v3 = vand.u32 2147483647, %v2933_v45 }
 0x1e8   :  { %1339 = vmatpush.msrb.mxu0 %v1302_v48  ;;  %v991_v51 = vmul.f32 %v990_v37, %v2841_v31  ;;  %v1028_v11 = vand.u32 2147483648, %v2933_v45  ;;  %v855_v52 = vmul.f32 %v854_v49, %v2530_v25  ;;  %v650_v7 = vadd.f32 0.014752088, %v649_v23 }
 0x1e9   :  { %v1287_v35 = vadd.f32 1.0, %v1726_v36  ;;  %v1019_v54 = vsub.f32 1.0, %v1018_v38  ;;  %v688_v47 = vadd.f32 0.001143296, %v2915_v61  ;;  %v844_v46 = vmul.f32 %v2834_v21, %v2530_v25  ;;  %v2993_v36 = vld [vmem:[%s3249_s3] sm:$0xff] }
 0x1ea   :  { %v1721_v29 = vclamps-f32 %v991_v51, 1.0  ;;  %vm1023_vm8 = vweird.f32 %v1824_v5  ;;  %v2964_v59 = vadd.f32 1.0, %v855_v52  ;;  %v651_v39 = vmul.f32 %v650_v7, %v2421_v60 }
 0x1eb   :  { %v1826_v24 = vpop.eup %1825  ;;  %v1303_v31 = vmul.f32 %v1287_v35, %v2837_v42  ;;  %v1020_v6 = vmul.f32 %v1824_v5, %v1019_v54  ;;  %v689_v10 = vmul.f32 %v688_v47, %v3424_v63  ;;  %v1006_v56 = vmul.f32 %v1005_v16, %v3429_v32  ;;  %v3435_v47 = vld [vmem:[#allocation31_spill] sm:$0xff] }
 0x1ec   :  { %v1282_v20 = vadd.f32 1.0, %v1721_v29  ;;  %v818_v61 = vmul.f32 %v1826_v24, %v2948_v14  ;;  %1827 = vrcp.f32 %v2964_v59  ;;  %vm1022_vm11 = vweird.f32 %v2933_v45 }
 0x1ed   :  { %1371 = vmatpush.msrb.mxu1 %v1303_v31  ;;  %v1021_v25 = vadd.f32 %v1824_v5, %v1020_v6  ;;  %vm1027_vm14 = vcmp.eq.f32.partialorder %v1026_v3, 8.507059e+37  ;;  %v1029_v21 = vor.u32 1.1754944e-38, %v1028_v11  ;;  %vm1024_vm5 = vmor %vm1022_vm11, %vm1023_vm8  ;;  %v652_v2 = vadd.f32 0.112945676, %v651_v39  ;;  %v3434_v11 = vld [vmem:[#allocation24_spill] sm:$0xff] }
 0x1ee   :  { %v1298_v42 = vmul.f32 %v1282_v20, %v3430_v9  ;;  %v819_v43 = vsub.f32 1.0, %v818_v61  ;;  %v690_v12 = vadd.f32 0.014752088, %v689_v10  ;;  %vm823_vm0 = vweird.f32 %v1826_v24  ;;  %v3436_v31 = vld [vmem:[#allocation28_spill] sm:$0xff] }
 0x1ef   :  { %v1025_v55 = vsel %vm1024_vm5, %v1824_v5, %v1021_v25  ;;  %v826_v58 = vand.u32 2147483647, %v2948_v14  ;;  %v828_v15 = vand.u32 2147483648, %v2948_v14  ;;  %v653_v45 = vmul.f32 %v652_v2, %v2421_v60 }
 0x1f0   :  { %1340 = vmatpush.msrb.mxu0 %v1298_v42  ;;  %v1030_v33 = vsel %vm1027_vm14, %v1029_v21, %v1025_v55  ;;  %v820_v26 = vmul.f32 %v1826_v24, %v819_v43  ;;  %v691_v8 = vmul.f32 %v690_v12, %v3424_v63  ;;  %v642_v53 = vmul.f32 %v3431_v13, %v2421_v60  ;;  %v3010_v21 = vld [vmem:[%s3249_s3 + $0x8] sm:$0xff] }
 0x1f1   :  { %v806_v40 = vmul.f32 %v2831_v50, %v3432_v18  ;;  %v611_v4 = vmul.f32 0.5, %v3433_v30  ;;  %v1031_v41 = vmul.f32 %v1030_v33, %v1006_v56  ;;  %vm822_vm12 = vweird.f32 %v2948_v14  ;;  %v3437_v43 = vld [vmem:[#allocation26_spill] sm:$0xff] }
 0x1f2   :  { %v1828_v28 = vpop.eup %1827  ;;  %v821_v22 = vadd.f32 %v1826_v24, %v820_v26  ;;  %v654_v19 = vadd.f32 0.4994258, %v653_v45  ;;  %v692_v57 = vadd.f32 0.112945676, %v691_v8  ;;  %v845_v0 = vadd.f32 1.1283791, %v844_v46  ;;  %vm824_vm4 = vmor %vm822_vm12, %vm823_vm0 }
 0x1f3   :  { %v1722_v62 = vclamps-f32 %v1031_v41, 1.0  ;;  %v829_v17 = vor.u32 1.1754944e-38, %v828_v15  ;;  %v858_v27 = vmul.f32 %v1828_v28, %v2964_v59  ;;  %vm827_vm15 = vcmp.eq.f32.partialorder %v826_v58, 8.507059e+37  ;;  %v3438_v41 = vld [vmem:[#allocation21_spill] sm:$0xff] }
 0x1f4   :  { %v825_v34 = vsel %vm824_vm4, %v1826_v24, %v821_v22  ;;  %v655_v50 = vmul.f32 %v654_v19, %v2421_v60  ;;  %v693_v23 = vmul.f32 %v692_v57, %v3424_v63  ;;  %v868_v14 = vand.u32 2147483648, %v2964_v59 }
 0x1f5   :  { %v1283_v5 = vadd.f32 1.0, %v1722_v62  ;;  %v830_v44 = vsel %vm827_vm15, %v829_v17, %v825_v34  ;;  %v859_v48 = vsub.f32 1.0, %v858_v27  ;;  %vm1311_vm7 = vcmask 261120  }
 0x1f6   :  { %v831_v1 = vmul.f32 %v830_v44, %v806_v40  ;;  %v656_v49 = vadd.f32 1.0, %v655_v50  ;;  %v694_v16 = vadd.f32 0.4994258, %v693_v23  ;;  %vm863_vm8 = vweird.f32 %v1828_v28  ;;  %1739 = vmatmul.msk.f32.vlgmr.msrb.gmra.mxu2 %vm1311_vm7, %v2993_v36  ;;  %1744 = vmatmul.msk.f32.vlgmr.msrb.gmra.mxu3 %vm1311_vm7, %v2993_v36  ;;  %v3439_v50 = vld [vmem:[#allocation22_spill] sm:$0xff]  ;;  %v3440_v44 = vld [vmem:[#allocation19_spill] sm:$0xff] }
 0x1f7   :  { %v1299_v37 = vmul.f32 %v1283_v5, %v611_v4  ;;  %v860_v38 = vmul.f32 %v1828_v28, %v859_v48  ;;  %v866_v51 = vand.u32 2147483647, %v2964_v59  ;;  %v606_v52 = vmul.f32 0.5, %v3434_v11  ;;  %v1308_v4 = vld [vmem:[%s3249_s3 + $0x10] sm:$0xff] }
 0x1f8   :  { %v1717_v3 = vclamps-f32 %v831_v1, 1.0  ;;  %1829 = vrcp.f32 %v656_v49  ;;  %vm862_vm11 = vweird.f32 %v2964_v59  ;;  %v695_v54 = vmul.f32 %v694_v16, %v3424_v63  ;;  %v1309_v16 = vld [vmem:[%s3249_s3 + $0x18] sm:$0xff] }
 0x1f9   :  { %1372 = vmatpush.msrb.mxu1 %v1299_v37  ;;  %v861_v35 = vadd.f32 %v1828_v28, %v860_v38  ;;  %v643_v7 = vadd.f32 0.18741608, %v642_v53  ;;  %v682_v46 = vmul.f32 %v3435_v47, %v3424_v63  ;;  %vm864_vm14 = vmor %vm862_vm11, %vm863_vm8  ;;  %v869_v24 = vor.u32 1.1754944e-38, %v868_v14 }
 0x1fa   :  { %v1278_v29 = vadd.f32 1.0, %v1717_v3  ;;  %v846_v6 = vmul.f32 %v845_v0, %v3436_v31  ;;  %vm867_vm5 = vcmp.eq.f32.partialorder %v866_v51, 8.507059e+37  ;;  %v696_v10 = vadd.f32 1.0, %v695_v54  ;;  %v3441_v51 = vld [vmem:[#allocation20_spill] sm:$0xff] }
 0x1fb   :  { %v865_v39 = vsel %vm864_vm14, %v1828_v28, %v861_v35  ;;  %v644_v59 = vmul.f32 %v643_v7, %v2421_v60  ;;  %v683_v25 = vadd.f32 0.18741608, %v682_v46  ;;  %v607_v2 = vmul.f32 0.5, %v3437_v43  ;;  %v1310_v35 = vld [vmem:[%s3249_s3 + $0x20] sm:$0xf] }
 0x1fc   :  { %v1294_v32 = vmul.f32 %v1278_v29, %v606_v52  ;;  %v870_v56 = vsel %vm867_vm5, %v869_v24, %v865_v39  ;;  %1831 = vrcp.f32 %v696_v10  ;;  %v668_v15 = vand.u32 2147483648, %v656_v49 }
 0x1fd   :  { %v871_v20 = vmul.f32 %v870_v56, %v846_v6  ;;  %v645_v60 = vadd.f32 1.1283791, %v644_v59  ;;  %v684_v58 = vmul.f32 %v683_v25, %v3424_v63  ;;  %v666_v8 = vand.u32 2147483647, %v656_v49 }
 0x1fe   :  { %v1830_v61 = vpop.eup %1829  ;;  %1341 = vmatpush.msrb.mxu0 %v1294_v32  ;;  %1745 = vmatmul.msk.f32.gmra.mxu3 %vm1311_vm7, %v3010_v21  ;;  %vm662_vm12 = vweird.f32 %v656_v49  ;;  %v669_v40 = vor.u32 1.1754944e-38, %v668_v15  ;;  %v708_v22 = vand.u32 2147483648, %v696_v10  ;;  %v706_v0 = vand.u32 2147483647, %v696_v10 }
 0x1ff   :  { %v1718_v9 = vclamps-f32 %v871_v20, 1.0  ;;  %v658_v42 = vmul.f32 %v1830_v61, %v656_v49  ;;  %1740 = vmatmul.msk.f32.gmra.mxu2 %vm1311_vm7, %v3010_v21  ;;  %vm663_vm0 = vweird.f32 %v1830_v61  ;;  %v685_v18 = vadd.f32 1.1283791, %v684_v58 }
 0x200   :  { %vm664_vm4 = vmor %vm662_vm12, %vm663_vm0  ;;  %v646_v63 = vmul.f32 %v645_v60, %v3438_v41  ;;  %vm667_vm15 = vcmp.eq.f32.partialorder %v666_v8, 8.507059e+37  ;;  %vm702_vm11 = vweird.f32 %v696_v10  ;;  %v709_v34 = vor.u32 1.1754944e-38, %v708_v22 }
 0x201   :  { %v1279_v12 = vadd.f32 1.0, %v1718_v9  ;;  %v659_v55 = vsub.f32 1.0, %v658_v42  ;;  %v686_v23 = vmul.f32 %v685_v18, %v3439_v50  ;;  %vm707_vm5 = vcmp.eq.f32.partialorder %v706_v0, 8.507059e+37 }
 0x202   :  { %v1832_v33 = vpop.eup %1831  ;;  %v602_v48 = vmul.f32 0.5, %v3440_v44  ;;  %v603_v3 = vmul.f32 0.5, %v3441_v51 }
 0x203   :  { %v1295_v26 = vmul.f32 %v1279_v12, %v607_v2  ;;  %v660_v45 = vmul.f32 %v1830_v61, %v659_v55  ;;  %v698_v13 = vmul.f32 %v1832_v33, %v696_v10  ;;  %vm703_vm8 = vweird.f32 %v1832_v33 }
 0x204   :  { %vm704_vm14 = vmor %vm702_vm11, %vm703_vm8 }
 0x205   :  { %1373 = vmatpush.msrb.mxu1 %v1295_v26  ;;  %v661_v53 = vadd.f32 %v1830_v61, %v660_v45  ;;  %v699_v30 = vsub.f32 1.0, %v698_v13 }
 0x206   :  { %1746 = vmatmul.msk.f32.gmra.mxu3 %vm1311_vm7, %v1308_v4 }
 0x207   :  { %v665_v28 = vsel %vm664_vm4, %v1830_v61, %v661_v53  ;;  %1741 = vmatmul.msk.f32.gmra.mxu2 %vm1311_vm7, %v1308_v4  ;;  %v700_v57 = vmul.f32 %v1832_v33, %v699_v30 }
 0x208   :  { %v670_v19 = vsel %vm667_vm15, %v669_v40, %v665_v28 }
 0x209   :  { %v671_v62 = vmul.f32 %v670_v19, %v646_v63  ;;  %v701_v17 = vadd.f32 %v1832_v33, %v700_v57  ;;  %v3442_v19 = vld [vmem:[#allocation2_spill] sm:$0xff] }
 0x20a   :  { %vm3444_vm0 = vcmp.lt.s32.totalorder %v3442_v19, 16  ;;  %vm3448_vm4 = vcmp.lt.s32.totalorder %v3442_v19, 15 }
 0x20b   :  { %v1713_v27 = vclamps-f32 %v671_v62, 1.0  ;;  %v705_v5 = vsel %vm704_vm14, %v1832_v33, %v701_v17  ;;  %vm3452_vm15 = vmmov %vm3448_vm4 }
 0x20c   :  { %v710_v1 = vsel %vm707_vm5, %v709_v34, %v705_v5  ;;  %vm3455_vm8 = vmmov %vm3448_vm4 }
 0x20d   :  { %v1274_v14 = vadd.f32 1.0, %v1713_v27  ;;  %v711_v49 = vmul.f32 %v710_v1, %v686_v23  ;;  %vm3457_vm14 = vmmov %vm3448_vm4 }
 0x20e   :  { %1747 = vmatmul.msk.f32.gmra.mxu3 %vm1311_vm7, %v1309_v16 }
 0x20f   :  { %v1290_v37 = vmul.f32 %v1274_v14, %v602_v48  ;;  %1742 = vmatmul.msk.f32.gmra.mxu2 %vm1311_vm7, %v1309_v16  ;;  %v1714_v38 = vclamps-f32 %v711_v49, 1.0 }
 0x211   :  { %1342 = vmatpush.msrb.mxu0 %v1290_v37  ;;  %v1275_v11 = vadd.f32 1.0, %v1714_v38 }
 0x212   :  { %1729 = vmatmul.msk.f32.vlgmr.msrb.gmra.mxu0 %vm1311_vm7, %v2993_v36 }
 0x213   :  { %v1291_v52 = vmul.f32 %v1275_v11, %v603_v3 }
 0x215   :  { %1374 = vmatpush.msrb.mxu1 %v1291_v52 }
 0x216   :  { %1734 = vmatmul.msk.f32.vlgmr.msrb.gmra.mxu1 %vm1311_vm7, %v2993_v36  ;;  %1748 = vmatmul.msk.f32.gmra.mxu3 %vm1311_vm7, %v1310_v35 }
 0x217   :  { %1743 = vmatmul.msk.f32.gmra.mxu2 %vm1311_vm7, %v1310_v35 }
 0x21a   :  { %1730 = vmatmul.msk.f32.gmra.mxu0 %vm1311_vm7, %v3010_v21 }
 0x21e   :  { %1735 = vmatmul.msk.f32.gmra.mxu1 %vm1311_vm7, %v3010_v21 }
 0x222   :  { %1731 = vmatmul.msk.f32.gmra.mxu0 %vm1311_vm7, %v1308_v4 }
 0x226   :  { %1736 = vmatmul.msk.f32.gmra.mxu1 %vm1311_vm7, %v1308_v4  ;;  %v1667_v4 = vld [vmem:[%s3250_s4] sm:$0xf] }
 0x22a   :  { %1732 = vmatmul.msk.f32.gmra.mxu0 %vm1311_vm7, %v1309_v16 }
 0x22e   :  { %1737 = vmatmul.msk.f32.gmra.mxu1 %vm1311_vm7, %v1309_v16 }
 0x232   :  { %1733 = vmatmul.msk.f32.gmra.mxu0 %vm1311_vm7, %v1310_v35 }
 0x236   :  { %1738 = vmatmul.msk.f32.gmra.mxu1 %vm1311_vm7, %v1310_v35  ;;  %vm3443_vm7 = vcmp.lt.s32.totalorder %v3442_v19, 17 }
 0x237   :  { %vm3445_vm12 = vmmov %vm3443_vm7 }
 0x279   :  { %v1408_v6 = vpop.f32.mrf.mxu2  ;;  %v1440_v39 = vpop.f32.mrf.mxu3 }
 0x27a   :  { %v1482_v32 = vrot.slane %v1440_v39, 4  ;;  %v1481_v59 = vrot.slane %v1408_v6, 4 }
 0x281   :  { %v1443_v25 = vpop.f32.mrf.mxu3 }
 0x282   :  { %v1411_v21 = vpop.f32.mrf.mxu2  ;;  %v1534_v9 = vrot.slane %v1443_v25, 4 }
 0x283   :  { %v1533_v42 = vrot.slane %v1411_v21, 4 }
 0x289   :  { %v3077_v55 = vpop.f32.mrf.mxu3 }
 0x28a   :  { %v1570_v60 = vrot.slane %v3077_v55, 4  ;;  %v3083_v33 = vpop.f32.mrf.mxu2 }
 0x28b   :  { %v1569_v26 = vrot.slane %v3083_v33, 4 }
 0x28f   :  { %v1344_v36 = vpop.f32.mrf.mxu0 }
 0x290   :  { %1455 = vrot.lane.b32.xlu2 %v1344_v36, %s1840_s28  ;;  %v1479_v47 = vrot.slane %v1344_v36, 4 }
 0x291   :  { %v1449_v8 = vpop.f32.mrf.mxu3 }
 0x292   :  { %v1417_v13 = vpop.f32.mrf.mxu2  ;;  %v1622_v53 = vrot.slane %v1449_v8, 4 }
 0x293   :  { %v1376_v54 = vpop.f32.mrf.mxu1  ;;  %v1621_v18 = vrot.slane %v1417_v13, 4 }
 0x294   :  { %v1480_v7 = vrot.slane %v1376_v54, 4  ;;  %1457 = vrot.lane.b32.xlu0 %v1376_v54, %s1840_s28 }
 0x296   :  { %1489 = vrot.lane.b32.xlu1 %v1480_v7, %s1833_s0 }
 0x297   :  { %v1347_v29 = vpop.f32.mrf.mxu0 }
 0x298   :  { %v1531_v31 = vrot.slane %v1347_v29, 4 }
 0x299   :  { %v1452_v40 = vpop.f32.mrf.mxu3 }
 0x29a   :  { %v1420_v30 = vpop.f32.mrf.mxu2 }
 0x29b   :  { %v1379_v46 = vpop.f32.mrf.mxu1 }
 0x29c   :  { %1509 = vrot.lane.b32.xlu2 %v1379_v46, %s1834_s22  ;;  %1487 = vrot.lane.b32.xlu0 %v1479_v47, %s1833_s0  ;;  %v1532_v24 = vrot.slane %v1379_v46, 4 }
 0x29e   :  { %1507 = vrot.lane.b32.xlu1 %v1347_v29, %s1834_s22 }
 0x29f   :  { %v3065_v20 = vpop.f32.mrf.mxu0 }
 0x2a0   :  { %v1567_v61 = vrot.slane %v3065_v20, 4 }
 0x2a3   :  { %v3060_v10 = vpop.f32.mrf.mxu1 }
 0x2a4   :  { %1541 = vrot.lane.b32.xlu0 %v1532_v24, %s1835_s23  ;;  %1539 = vrot.lane.b32.xlu2 %v1531_v31, %s1835_s23  ;;  %v1568_v56 = vrot.slane %v3060_v10, 4 }
 0x2a6   :  { %1459 = vrot.lane.b32.xlu1 %v1408_v6, %s1840_s28 }
 0x2a7   :  { %v1353_v12 = vpop.f32.mrf.mxu0 }
 0x2a8   :  { %v1619_v58 = vrot.slane %v1353_v12, 4 }
 0x2ab   :  { %v1385_v43 = vpop.f32.mrf.mxu1 }
 0x2ac   :  { %1493 = vrot.lane.b32.xlu0 %v1482_v32, %s1833_s0  ;;  %1461 = vrot.lane.b32.xlu2 %v1440_v39, %s1840_s28  ;;  %v1620_v2 = vrot.slane %v1385_v43, 4 }
 0x2ae   :  { %1577 = vrot.lane.b32.xlu1 %v1568_v56, %s1836_s24 }
 0x2af   :  { %v1356_v45 = vpop.f32.mrf.mxu0 }
 0x2b3   :  { %v1388_v15 = vpop.f32.mrf.mxu1 }
 0x2b4   :  { %1491 = vrot.lane.b32.xlu2 %v1481_v59, %s1833_s0  ;;  %1575 = vrot.lane.b32.xlu0 %v1567_v61, %s1836_s24 }
 0x2b6   :  { %1513 = vrot.lane.b32.xlu1 %v1443_v25, %s1834_s22 }
 0x2bc   :  { %1545 = vrot.lane.b32.xlu2 %v1534_v9, %s1835_s23  ;;  %1511 = vrot.lane.b32.xlu0 %v1411_v21, %s1834_s22 }
 0x2be   :  { %1543 = vrot.lane.b32.xlu1 %v1533_v42, %s1835_s23 }
 0x2c4   :  { %1597 = vrot.lane.b32.xlu2 %v1385_v43, %s1837_s25  ;;  %1629 = vrot.lane.b32.xlu0 %v1620_v2, %s1838_s26 }
 0x2c6   :  { %1595 = vrot.lane.b32.xlu1 %v1353_v12, %s1837_s25  ;;  %v3458_v12 = vld [vmem:[#allocation7_spill] sm:$0xff] }
 0x2c7   :  { %vm3459_vm5 = vcmp.ge.s32.totalorder %v3458_v12, 1 }
 0x2cc   :  { %1581 = vrot.lane.b32.xlu0 %v1570_v60, %s1836_s24  ;;  %1627 = vrot.lane.b32.xlu2 %v1619_v58, %s1838_s26 }
 0x2ce   :  { %1649 = vrot.lane.b32.xlu1 %v1388_v15, %s1839_s27 }
 0x2d4   :  { %1579 = vrot.lane.b32.xlu2 %v1569_v26, %s1836_s24  ;;  %1647 = vrot.lane.b32.xlu0 %v1356_v45, %s1839_s27 }
 0x2d6   :  { %1601 = vrot.lane.b32.xlu1 %v1449_v8, %s1837_s25 }
 0x2dc   :  { %1599 = vrot.lane.b32.xlu0 %v1417_v13, %s1837_s25  ;;  %1633 = vrot.lane.b32.xlu2 %v1622_v53, %s1838_s26 }
 0x2de   :  { %1631 = vrot.lane.b32.xlu1 %v1621_v18, %s1838_s26 }
 0x2e4   :  { %1653 = vrot.lane.b32.xlu0 %v1452_v40, %s1839_s27  ;;  %1651 = vrot.lane.b32.xlu2 %v1420_v30, %s1839_s27 }
 0x2e6   :  { %1670 = vperm.xlu1 %1799, %v1667_v4   ;;  %v3466_v4 = vld [vmem:[#allocation3_spill] sm:$0xff] }
 0x2ea   :  { %v1456_v41 = vpop.permute.xlu2 %1455 }
 0x2f6   :  { %v1510_v63 = vpop.permute.xlu2 %1509 }
 0x2fe   :  { %v1540_v28 = vpop.permute.xlu2 %1539 }
 0x306   :  { %v1458_v22 = vpop.permute.xlu0 %1457  ;;  %v1462_v62 = vpop.permute.xlu2 %1461 }
 0x307   :  { %v1465_v57 = vsel %vm3443_vm7, %v1456_v41, %v1458_v22 }
 0x308   :  { %v1490_v0 = vpop.permute.xlu1 %1489  ;;  %v1468_v60 = vsel %vm3459_vm5, %v1465_v57, 0.0 }
 0x30e   :  { %v1488_v17 = vpop.permute.xlu0 %1487  ;;  %v1492_v34 = vpop.permute.xlu2 %1491 }
 0x30f   :  { %v1496_v23 = vsel %vm3444_vm0, %v1490_v0, %v1492_v34 }
 0x310   :  { %v1508_v27 = vpop.permute.xlu1 %1507  ;;  %v1501_v14 = vsel %vm2119_vm2, %v1496_v23, 0.0  ;;  %vm3451_vm2 = vmmov %vm3443_vm7  ;;  %v3472_v23 = vld [vmem:[#allocation4_spill] sm:$0xff] }
 0x311   :  { %v1466_v39 = vsel %vm3451_vm2, %v1462_v62, %v1456_v41  ;;  %v1517_v9 = vsel %vm3455_vm8, %v1508_v27, %v1510_v63  ;;  %vm3456_vm11 = vmmov %vm3451_vm2 }
 0x312   :  { %v1467_v15 = vsel %vm2321_vm6, %v1466_v39, 0.0  ;;  %vm3461_vm7 = vmmov %vm3444_vm0  ;;  %vm3468_vm6 = vcmp.lt.s32.totalorder %v3466_v4, 15 }
 0x313   :  { %vm3471_vm2 = vmmov %vm3459_vm5 }
 0x316   :  { %v1542_v50 = vpop.permute.xlu0 %1541  ;;  %v1546_v38 = vpop.permute.xlu2 %1545 }
 0x318   :  { %v1460_v5 = vpop.permute.xlu1 %1459 }
 0x319   :  { %v1464_v44 = vsel %vm3445_vm12, %v1458_v22, %v1460_v5  ;;  %v1463_v42 = vsel %vm3456_vm11, %v1460_v5, %v1462_v62  ;;  %vm3477_vm11 = vcmp.lt.s32.totalorder %v3442_v19, 127 }
 0x31a   :  { %v1469_v49 = vsel %vm2174_vm1, %v1464_v44, 0.0  ;;  %vm3450_vm1 = vmmov %vm3444_vm0  ;;  %v3474_v44 = vld [vmem:[#allocation6_spill] sm:$0xff] }
 0x31b   :  { %v1505_v16 = vadd.f32 %v1501_v14, %v1469_v49  ;;  %vm3479_vm5 = vmmov %vm3477_vm11 }
 0x31e   :  { %v1494_v37 = vpop.permute.xlu0 %1493  ;;  %v3108_v52 = vpop.permute.xlu2 %1597 }
 0x31f   :  { %v1498_v6 = vsel %vm3450_vm1, %v1494_v37, %v1488_v17  ;;  %v1495_v26 = vsel %vm3461_vm7, %v1492_v34, %v1494_v37 }
 0x320   :  { %v1578_v51 = vpop.permute.xlu1 %1577  ;;  %v1499_v21 = vsel %vm2273_vm3, %v1498_v6, 0.0  ;;  %vm3463_vm3 = vcmp.lt.s32.totalorder %v3442_v19, 1 }
 0x321   :  { %v1549_v53 = vsel %vm3463_vm3, %v1540_v28, %v1542_v50  ;;  %v1503_v18 = vadd.f32 %v1499_v21, %v1467_v15  ;;  %vm3465_vm12 = vmmov %vm3463_vm3 }
 0x322   :  { %v1550_v30 = vsel %vm3465_vm12, %v1546_v38, %v1540_v28  ;;  %vm3470_vm1 = vmmov %vm3463_vm3 }
 0x326   :  { %v1576_v3 = vpop.permute.xlu0 %1575  ;;  %v3114_v29 = vpop.permute.xlu2 %1627 }
 0x328   :  { %v1514_v11 = vpop.permute.xlu1 %1513 }
 0x329   :  { %v1518_v32 = vsel %vm3452_vm15, %v1514_v11, %v1508_v27  ;;  %vm3473_vm15 = vcmp.ge.s32.totalorder %v3472_v23, 1 }
 0x32a   :  { %v1519_v8 = vsel %vm2296_vm10, %v1518_v32, 0.0  ;;  %vm3469_vm10 = vmmov %vm3463_vm3  ;;  %v1551_v5 = vsel %vm3473_vm15, %v1550_v30, 0.0 }
 0x32b   :  { %v1523_v57 = vadd.f32 %v1519_v8, %v1503_v18  ;;  %vm3481_vm3 = vmmov %vm3479_vm5 }
 0x32d   :  { %v1555_v49 = vadd.f32 %v1551_v5, %v1523_v57  ;;  %v3501_v57 = vld [vmem:[#allocation5_spill] sm:$0xff] }
 0x32e   :  { %v1512_v35 = vpop.permute.xlu0 %1511  ;;  %v1580_v56 = vpop.permute.xlu2 %1579 }
 0x32f   :  { %v1516_v36 = vsel %vm3448_vm4, %v1510_v63, %v1512_v35  ;;  %v1515_v43 = vsel %vm3457_vm14, %v1512_v35, %v1514_v11  ;;  %vm3467_vm4 = vcmp.ge.s32.totalorder %v3466_v4, 1  ;;  %vm3478_vm14 = vmmov %vm3477_vm11  ;;  %v1559_v6 = vadd.f32 %v1555_v49, %v3065_v20  ;;  %v3508_v49 = vld [vmem:[#allocation8_spill] sm:$0xff] }
 0x330   :  { %v1521_v7 = vsel %vm2148_vm9, %v1516_v36, 0.0  ;;  %v1544_v47 = vpop.permute.xlu1 %1543  ;;  %vm3453_vm9 = vmmov %vm3444_vm0  ;;  %vm3464_vm0 = vcmp.lt.s32.totalorder %v3458_v12, 15  ;;  %v1470_v41 = vsel %vm3467_vm4, %v1463_v42, 0.0  ;;  %v1522_v63 = vsel %vm3468_vm6, %v1515_v43, 0.0 }
 0x331   :  { %v1525_v46 = vadd.f32 %v1521_v7, %v1505_v16  ;;  %v1497_v59 = vsel %vm3453_vm9, %v1488_v17, %v1490_v0  ;;  %v1520_v40 = vsel %vm3464_vm0, %v1517_v9, 0.0  ;;  %v1506_v22 = vadd.f32 %v1495_v26, %v1470_v41  ;;  %vm3476_vm8 = vmmov %vm3467_vm4 }
 0x332   :  { %v1504_v13 = vadd.f32 %v1497_v59, %v1468_v60  ;;  %v1547_v0 = vsel %vm3469_vm10, %v1544_v47, %v1546_v38  ;;  %v1548_v62 = vsel %vm3470_vm1, %v1542_v50, %v1544_v47  ;;  %v1552_v17 = vsel %vm3471_vm2, %v1549_v53, 0.0  ;;  %vm3480_vm7 = vmmov %vm3464_vm0  ;;  %v3495_v53 = vld [vmem:[#allocation10_spill] sm:$0xff] }
 0x333   :  { %v1526_v34 = vadd.f32 %v1522_v63, %v1506_v22  ;;  %vm3475_vm9 = vcmp.ge.s32.totalorder %v3474_v44, 1  ;;  %v1554_v14 = vsel %vm3476_vm8, %v1547_v0, 0.0  ;;  %v1584_v50 = vsel %vm3477_vm11, %v1578_v51, %v1580_v56  ;;  %vm3486_vm1 = vmmov %vm3473_vm15 }
 0x334   :  { %v1524_v27 = vadd.f32 %v1520_v40, %v1504_v13  ;;  %v1553_v48 = vsel %vm3475_vm9, %v1548_v62, 0.0  ;;  %v1585_v38 = vsel %vm3478_vm14, %v1576_v3, %v1578_v51  ;;  %v1588_v54 = vsel %vm3480_vm7, %v1584_v50, 0.0 }
 0x335   :  { %v1557_v11 = vadd.f32 %v1553_v48, %v1525_v46  ;;  %v1558_v35 = vadd.f32 %v1554_v14, %v1526_v34  ;;  %vm3482_vm0 = vcmp.lt.s32.totalorder %v3442_v19, 113  ;;  %vm3484_vm4 = vcmp.lt.s32.totalorder %v3472_v23, 15 }
 0x336   :  { %v3116_v24 = vpop.permute.xlu0 %1629  ;;  %v1556_v1 = vadd.f32 %v1552_v17, %v1524_v27  ;;  %v1634_v16 = vpop.permute.xlu2 %1633  ;;  %vm3483_vm12 = vmmov %vm3482_vm0  ;;  %vm3485_vm10 = vcmp.lt.s32.totalorder %v3474_v44, 15  ;;  %vm3492_vm8 = vcmp.ge.s32.totalorder %v3474_v44, 1  ;;  %vm3496_vm14 = vnez %v3495_v53  ;;  %v3503_v27 = vld [vmem:[#allocation11_spill] sm:$0xff] }
 0x337   :  { %vm3488_vm2 = vmmov %vm3482_vm0 }
 0x338   :  { %v1596_v31 = vpop.permute.xlu1 %1595  ;;  %v1560_v47 = vadd.f32 %v1556_v1, %v3060_v10  ;;  %v1562_v10 = vadd.f32 %v1558_v35, %v3077_v55  ;;  %vm3489_vm15 = vmmov %vm3482_vm0  ;;  %v3490_v55 = vld [vmem:[#allocation15_spill] sm:$0xff] }
 0x339   :  { %v1605_v39 = vsel %vm3482_vm0, %v1596_v31, %v3108_v52  ;;  %vm3491_vm9 = vnez %v3490_v55 }
 0x33a   :  { %v1592_v32 = vadd.f32 %v1588_v54, %v1560_v47  ;;  %v1607_v59 = vsel %vm3486_vm1, %v1605_v39, 0.0 }
 0x33e   :  { %v1582_v61 = vpop.permute.xlu0 %1581  ;;  %v1652_v58 = vpop.permute.xlu2 %1651 }
 0x33f   :  { %v1586_v36 = vsel %vm3479_vm5, %v1582_v61, %v1576_v3  ;;  %v1583_v7 = vsel %vm3481_vm3, %v1580_v56, %v1582_v61  ;;  %v1587_v3 = vsel %vm3484_vm4, %v1585_v38, 0.0  ;;  %v1561_v56 = vadd.f32 %v1557_v11, %v3083_v33 }
 0x340   :  { %v3134_v2 = vpop.permute.xlu1 %1649  ;;  %v1590_v46 = vsel %vm3468_vm6, %v1586_v36, 0.0  ;;  %v1589_v20 = vsel %vm3485_vm10, %v1583_v7, 0.0  ;;  %v1591_v33 = vadd.f32 %v1587_v3, %v1559_v6  ;;  %vm3497_vm5 = vcmp.lt.s32.totalorder %v3442_v19, 111 }
 0x341   :  { %v1594_v42 = vadd.f32 %v1590_v46, %v1562_v10  ;;  %v1593_v15 = vadd.f32 %v1589_v20, %v1561_v56  ;;  %vm3498_vm7 = vmmov %vm3497_vm5  ;;  %vm3504_vm6 = vnez %v3503_v27 }
 0x342   :  { %v1611_v8 = vadd.f32 %v1607_v59, %v1591_v33  ;;  %v1656_v41 = vsel %vm3498_vm7, %v3134_v2, %v1652_v58  ;;  %vm3505_vm10 = vmmov %vm3497_vm5 }
 0x343   :  { %v1660_v34 = vsel %vm3504_vm6, %v1656_v41, 0.0  ;;  %vm3506_vm1 = vmmov %vm3497_vm5 }
 0x346   :  { %v1648_v28 = vpop.permute.xlu0 %1647 }
 0x347   :  { %v1657_v40 = vsel %vm3497_vm5, %v1648_v28, %v3134_v2 }
 0x348   :  { %v1602_v37 = vpop.permute.xlu1 %1601  ;;  %v1659_v17 = vsel %vm3484_vm4, %v1657_v40, 0.0 }
 0x349   :  { %v1606_v51 = vsel %vm3483_vm12, %v1602_v37, %v1596_v31  ;;  %vm3502_vm12 = vnez %v3501_v57 }
 0x34a   :  { %v1610_v31 = vsel %vm2043_vm13, %v1606_v51, 0.0  ;;  %vm3493_vm13 = vcmp.lt.s32.totalorder %v3442_v19, 112 }
 0x34b   :  { %vm3494_vm11 = vmmov %vm3493_vm13  ;;  %v1614_v13 = vadd.f32 %v1610_v31, %v1594_v42 }
 0x34c   :  { %vm3499_vm3 = vmmov %vm3494_vm11 }
 0x34d   :  { %vm3500_vm0 = vmmov %vm3499_vm3 }
 0x34e   :  { %v1600_v61 = vpop.permute.xlu0 %1599  ;;  %v1637_v22 = vsel %vm3500_vm0, %v3114_v29, %v3116_v24 }
 0x34f   :  { %v1603_v21 = vsel %vm3488_vm2, %v1600_v61, %v1602_v37  ;;  %v1604_v9 = vsel %vm3489_vm15, %v3108_v52, %v1600_v61  ;;  %v1638_v52 = vsel %vm3494_vm11, %v1634_v16, %v3114_v29  ;;  %v1643_v62 = vadd.f32 %v1637_v22, %v1611_v8 }
 0x350   :  { %v1608_v43 = vsel %vm3491_vm9, %v1604_v9, 0.0  ;;  %v1609_v12 = vsel %vm3492_vm8, %v1603_v21, 0.0  ;;  %v1632_v60 = vpop.permute.xlu1 %1631  ;;  %v1642_v0 = vsel %vm3502_vm12, %v1638_v52, 0.0  ;;  %vm3507_vm2 = vcmp.lt.s32.totalorder %v3474_v44, 15 }
 0x351   :  { %v1612_v26 = vadd.f32 %v1608_v43, %v1592_v32  ;;  %v1636_v45 = vsel %vm3493_vm13, %v3116_v24, %v1632_v60  ;;  %v1613_v30 = vadd.f32 %v1609_v12, %v1593_v15  ;;  %v1635_v63 = vsel %vm3499_vm3, %v1632_v60, %v1634_v16 }
 0x352   :  { %v1640_v18 = vsel %vm3496_vm14, %v1636_v45, 0.0  ;;  %v1646_v5 = vadd.f32 %v1642_v0, %v1614_v13  ;;  %vm3509_vm15 = vnez %v3508_v49  ;;  %v1663_v16 = vadd.f32 %v1659_v17, %v1643_v62 }
 0x353   :  { %v1644_v4 = vadd.f32 %v1640_v18, %v1612_v26  ;;  %v1645_v48 = vadd.f32 %v1635_v63, %v1613_v30  ;;  %vm3510_vm9 = vcmask 1043456  }
 0x354   :  { %vm3511_vm8 = vmmov %vm3510_vm9 }
 0x355   :  { %v1664_v14 = vadd.f32 %v1660_v34, %v1644_v4 }
 0x356   :  { %v1654_v2 = vpop.permute.xlu0 %1653 }
 0x357   :  { %v1655_v1 = vsel %vm3505_vm10, %v1652_v58, %v1654_v2  ;;  %v1658_v29 = vsel %vm3506_vm1, %v1654_v2, %v1648_v28 }
 0x358   :  { %v1661_v24 = vsel %vm3507_vm2, %v1655_v1, 0.0  ;;  %v1662_v23 = vsel %vm3509_vm15, %v1658_v29, 0.0  ;;  %v1671_v50 = vpop.permute.xlu1 %1670 }
 0x359   :  { %v1665_v37 = vadd.f32 %v1661_v24, %v1645_v48  ;;  %v1666_v38 = vadd.f32 %v1662_v23, %v1646_v5  ;;  %v1674_v11 = vadd.f32 %v1671_v50, %v1664_v14  ;;  %v1673_v35 = vadd.f32 %v1671_v50, %v1663_v16 }
 0x35b   :  { %v1676_v36 = vadd.f32 %v1671_v50, %v1666_v38  ;;  %v1681_v54 = vrot.slane %v1674_v11, 4  ;;  %v1675_v7 = vadd.f32 %v1671_v50, %v1665_v37 }
 0x35d   :  { %v1682_v47 = vrot.slane %v1676_v36, 4  ;;  %v1683_v6 = vsel %vm3510_vm9, %v1673_v35, %v1681_v54 }
 0x35e   :  { %1687 = vst [vmem:[%s3251_s5] sm:$0xff] %v1683_v6 }
 0x35f   :  { %v1684_v19 = vsel %vm3511_vm8, %v1675_v7, %v1682_v47 }
 0x360   :  { %1688 = vst [vmem:[%s3251_s5 + $0x8] sm:$0xff] %v1684_v19 }

</bundles_post_ra>
